<compile_context>
chip_gen: v5e
topology: v5e:2x2
jax: 0.10.0
libtpu: 0.0.40
codegen_flags: <defaults>
</compile_context>

<pallas_src>
import math
import functools

import jax
import jax.numpy as jnp
import numpy as np
from jax.experimental import pallas as pl
from jax.experimental.pallas import tpu as pltpu

# The Pallas kernel computes its f32 matmuls at full f32 fidelity on the MXU;
# force the pure-JAX reference onto the same path (TPU DEFAULT precision would
# otherwise degrade XLA-side f32 dots to a single bf16 pass and break a tight
# numerical comparison).
jax.config.update("jax_default_matmul_precision", "highest")


# --------------------------------------------------------------------------
# Fused kernel
# --------------------------------------------------------------------------
def _layernorm(h, gamma, beta, eps):
    mean = jnp.mean(h, axis=-1, keepdims=True)
    var = jnp.mean((h - mean) ** 2, axis=-1, keepdims=True)
    return (h - mean) * jax.lax.rsqrt(var + eps) * gamma + beta


def _encoder_kernel(x_ref, rrep_ref, wqkv_ref, bqkv_ref, wch_ref, bc_ref,
                    g1_ref, be1_ref, w1_ref, b1_ref, w2_ref, b2_ref,
                    g2_ref, be2_ref, o_ref, attn_ref, *, n_head, eps):
    x = x_ref[0]                                                  # (S, D)
    S, D = x.shape
    dk = D // n_head
    scale = 1.0 / math.sqrt(dk)

    # Fused Q/K/V projection: one MXU pass with a (D, 3D) weight.
    qkv = jnp.dot(x, wqkv_ref[...],
                  preferred_element_type=jnp.float32) + bqkv_ref[...]   # (S, 3D)

    # Buggy torch `.view(B, H, S, dk)` == row-major reshape of the (S, D) slab
    # to (H, S, dk):  head-row r = h*S + s' reads original row r // H and lane
    # chunk r % H.  Realised as:
    #   (1) row replication on the MXU with a constant 0/1 matrix (exact):
    #       (rrep @ qkv)[r, :] == qkv[r // H, :]
    #   (2) per-row lane-chunk select with iota masks (VPU only, no XLU
    #       shuffles, no per-row slicing).
    rep = jnp.dot(rrep_ref[...], qkv,
                  preferred_element_type=jnp.float32)             # (H*S, 3D)
    rep3 = rep.reshape(n_head, S, 3 * D)      # leading-dim split: layout-preserving

    hh = jax.lax.broadcasted_iota(jnp.int32, (n_head, S, dk), 0)
    ss = jax.lax.broadcasted_iota(jnp.int32, (n_head, S, dk), 1)
    chunk = (hh * S + ss) % n_head            # lane chunk used by this head-row

    q3 = jnp.zeros((n_head, S, dk), jnp.float32)
    k3 = jnp.zeros((n_head, S, dk), jnp.float32)
    v3 = jnp.zeros((n_head, S, dk), jnp.float32)
    for c in range(n_head):                   # D // dk chunks, tiny static loop
        m = chunk == c
        q3 = jnp.where(m, rep3[:, :, c * dk:(c + 1) * dk], q3)
        k3 = jnp.where(m, rep3[:, :, D + c * dk:D + (c + 1) * dk], k3)
        v3 = jnp.where(m, rep3[:, :, 2 * D + c * dk:2 * D + (c + 1) * dk], v3)

    # All heads at once on the MXU.
    score = jnp.einsum('hqd,hkd->hqk', q3, k3,
                       preferred_element_type=jnp.float32) * scale      # (H, S, S)

    # softmax -> secondary `attn` output only (reference quirk: `o` is built
    # from the PRE-softmax score, so this never feeds o_ref).
    mx = jnp.max(score, axis=-1, keepdims=True)
    e = jnp.exp(score - mx)
    inv = pl.reciprocal(jnp.sum(e, axis=-1, keepdims=True), approx=False)
    attn_ref[0] = (e * inv).astype(attn_ref.dtype)

    # Reference quirk reproduced exactly: `out = score @ v` (not `atten @ v`).
    out3 = jnp.einsum('hqk,hkd->hqd', score, v3,
                      preferred_element_type=jnp.float32)                # (H, S, dk)

    # concat + w_concat fused:  concat(out) @ Wc == sum_h out_h @ Wc[h*dk:(h+1)*dk, :]
    proj = jnp.einsum('hqd,hdm->hqm', out3, wch_ref[...],
                      preferred_element_type=jnp.float32).sum(axis=0) + bc_ref[...]

    # residual + LayerNorm1
    x1 = _layernorm(proj + x, g1_ref[...], be1_ref[...], eps)

    # FFN + residual + LayerNorm2
    hid = jnp.maximum(
        jnp.dot(x1, w1_ref[...], preferred_element_type=jnp.float32) + b1_ref[...],
        0.0)                                                             # (S, F)
    y = jnp.dot(hid, w2_ref[...],
                preferred_element_type=jnp.float32) + b2_ref[...]
    o_ref[0] = _layernorm(y + x1, g2_ref[...], be2_ref[...], eps).astype(o_ref.dtype)


# --------------------------------------------------------------------------
# pallas_call wrapper
# --------------------------------------------------------------------------
def encoder_layer(x, params, n_head, eps=1e-5):
    """Pallas implementation of EncoderLayer.forward(x, src_mask=None)."""
    B, S, D = x.shape
    assert D % n_head == 0
    dk = D // n_head
    F = params["w1"].shape[1]
    HS = n_head * S
    p = params

    # Constant 0/1 row-replication matrix: (rrep @ qkv)[r] == qkv[r // n_head].
    rrep = (jnp.arange(S, dtype=jnp.int32)[None, :]
            == (jnp.arange(HS, dtype=jnp.int32) // n_head)[:, None]).astype(x.dtype)

    # w_concat weight pre-split per head (free wrapper reshape) -> no in-kernel
    # head concat is ever needed.
    wc_heads = p["wc"].reshape(n_head, dk, D)

    kernel = functools.partial(_encoder_kernel, n_head=n_head, eps=eps)

    def full(shape):                      # replicated weight / bias spec
        return pl.BlockSpec(shape, lambda b, n=len(shape): (0,) * n)

    spec_x = pl.BlockSpec((1, S, D), lambda b: (b, 0, 0))
    spec_o = pl.BlockSpec((1, S, D), lambda b: (b, 0, 0))
    spec_attn = pl.BlockSpec((1, n_head, S, S), lambda b: (b, 0, 0, 0))

    in_specs = [spec_x,
                full((HS, S)),
                full((D, 3 * D)), full((1, 3 * D)),
                full((n_head, dk, D)), full((1, D)),
                full((1, D)), full((1, D)),
                full((D, F)), full((1, F)),
                full((F, D)), full((1, D)),
                full((1, D)), full((1, D))]

    # VMEM budget sized to the actual block footprint (double-buffered inputs
    # + outputs), with generous headroom; floor keeps Mosaic scratch happy.
    block_elems = (S * D + HS * S + D * 3 * D + 3 * D + n_head * dk * D
                   + 6 * D + D * F + F + F * D + S * D + n_head * S * S)
    vmem_limit = int(min(96 * 1024 * 1024,
                         max(8 * 1024 * 1024, 16 * 4 * block_elems)))

    flops_b = (2 * S * D * 3 * D               # fused QKV projection
               + 2 * HS * S * 3 * D            # row-replication matmul
               + 4 * n_head * S * S * dk       # score + score @ v
               + 2 * n_head * S * dk * D       # per-head w_concat
               + 2 * S * D * F + 2 * S * F * D)  # FFN
    weight_elems = (HS * S + D * 3 * D + 3 * D + n_head * dk * D + 6 * D
                    + D * F + F + F * D)
    bytes_io = 4 * (x.size + weight_elems + B * S * D + B * n_head * S * S)

    return pl.pallas_call(
        kernel,
        grid=(B,),
        in_specs=in_specs,
        out_specs=[spec_o, spec_attn],
        out_shape=[jax.ShapeDtypeStruct((B, S, D), x.dtype),
                   jax.ShapeDtypeStruct((B, n_head, S, S), x.dtype)],
        compiler_params=pltpu.CompilerParams(
            dimension_semantics=("parallel",),
            vmem_limit_bytes=vmem_limit),
        cost_estimate=pl.CostEstimate(
            flops=B * flops_b,
            transcendentals=B * n_head * S * S,
            bytes_accessed=bytes_io),
    )(x, rrep, p["wqkv"], p["bqkv"], wc_heads, p["bc"], p["g1"], p["be1"],
      p["w1"], p["b1"], p["w2"], p["b2"], p["g2"], p["be2"])


# --------------------------------------------------------------------------
# Pure-JAX reference (same semantics, incl. the `score @ v` quirk)
# --------------------------------------------------------------------------
def encoder_layer_ref(x, params, n_head, eps=1e-5):
    B, S, D = x.shape
    dk = D // n_head
    p = params

    def lin(t, w, b):
        return t @ w + b

    def ln(t, g, b):
        m = t.mean(-1, keepdims=True)
        var = ((t - m) ** 2).mean(-1, keepdims=True)
        return (t - m) / jnp.sqrt(var + eps) * g + b

    q = lin(x, p["wq"], p["bq"]).reshape(B, n_head, S, dk)
    k = lin(x, p["wk"], p["bk"]).reshape(B, n_head, S, dk)
    v = lin(x, p["wv"], p["bv"]).reshape(B, n_head, S, dk)
    score = jnp.einsum("bhsd,bhtd->bhst", q, k) / math.sqrt(dk)
    attn = jax.nn.softmax(score, axis=-1)
    out = jnp.einsum("bhst,bhtd->bhsd", score, v)          # reference bug kept
    cat = out.transpose(0, 2, 1, 3).reshape(B, S, D)
    x1 = ln(lin(cat, p["wc"], p["bc"]) + x, p["g1"], p["be1"])
    h = jax.nn.relu(lin(x1, p["w1"], p["b1"]))
    x2 = ln(lin(h, p["w2"], p["b2"]) + x1, p["g2"], p["be2"])
    return x2, attn


# --------------------------------------------------------------------------
# Deterministic parameter init (PyTorch-style; weights stored (in, out))
# --------------------------------------------------------------------------
def init_params(key, d_model, ffn_hidden, dtype=jnp.float32):
    keys = jax.random.split(key, 12)

    def lin_init(kw, kb, fan_in, fan_out):
        bound = 1.0 / math.sqrt(fan_in)
        w = jax.random.uniform(kw, (fan_in, fan_out), dtype, -bound, bound)
        b = jax.random.uniform(kb, (1, fan_out), dtype, -bound, bound)
        return w, b

    wq, bq = lin_init(keys[0], keys[1], d_model, d_model)
    wk, bk = lin_init(keys[2], keys[3], d_model, d_model)
    wv, bv = lin_init(keys[4], keys[5], d_model, d_model)
    wc, bc = lin_init(keys[6], keys[7], d_model, d_model)
    w1, b1 = lin_init(keys[8], keys[9], d_model, ffn_hidden)
    w2, b2 = lin_init(keys[10], keys[11], ffn_hidden, d_model)
    return dict(
        wq=wq, bq=bq, wk=wk, bk=bk, wv=wv, bv=bv, wc=wc, bc=bc,
        w1=w1, b1=b1, w2=w2, b2=b2,
        # Pre-fused QKV weight/bias for the kernel (built once at init time).
        wqkv=jnp.concatenate([wq, wk, wv], axis=1),
        bqkv=jnp.concatenate([bq, bk, bv], axis=1),
        g1=jnp.ones((1, d_model), dtype), be1=jnp.zeros((1, d_model), dtype),
        g2=jnp.ones((1, d_model), dtype), be2=jnp.zeros((1, d_model), dtype),
    )


# --------------------------------------------------------------------------
if __name__ == "__main__":
    B, S = 2, 8
    d_model, n_head, ffn_hidden = 32, 4, 64

    key = jax.random.PRNGKey(0)
    k_x, k_p = jax.random.split(key)
    x = jax.random.normal(k_x, (B, S, d_model), jnp.float32)
    params = init_params(k_p, d_model, ffn_hidden)

    out, attn = jax.jit(encoder_layer, static_argnums=(2,))(x, params, n_head)
    out = jax.block_until_ready(out)
    attn = jax.block_until_ready(attn)

    out_ref, attn_ref = encoder_layer_ref(x, params, n_head)
    np.testing.assert_allclose(np.asarray(out), np.asarray(out_ref),
                               rtol=1e-3, atol=1e-3)
    np.testing.assert_allclose(np.asarray(attn), np.asarray(attn_ref),
                               rtol=1e-3, atol=1e-3)

    assert out.shape == (B, S, d_model)
    assert attn.shape == (B, n_head, S, S)
    print("KERNEL_OK")
</pallas_src>

<mosaic_0001>
module attributes {stable_mosaic.version = 11 : i64} {
  func.func @_encoder_kernel(%arg0: i32, %arg1: memref<1x8x32xf32, #tpu.memory_space<vmem>>, %arg2: memref<32x8xf32, #tpu.memory_space<vmem>>, %arg3: memref<32x96xf32, #tpu.memory_space<vmem>>, %arg4: memref<1x96xf32, #tpu.memory_space<vmem>>, %arg5: memref<4x8x32xf32, #tpu.memory_space<vmem>>, %arg6: memref<1x32xf32, #tpu.memory_space<vmem>>, %arg7: memref<1x32xf32, #tpu.memory_space<vmem>>, %arg8: memref<1x32xf32, #tpu.memory_space<vmem>>, %arg9: memref<32x64xf32, #tpu.memory_space<vmem>>, %arg10: memref<1x64xf32, #tpu.memory_space<vmem>>, %arg11: memref<64x32xf32, #tpu.memory_space<vmem>>, %arg12: memref<1x32xf32, #tpu.memory_space<vmem>>, %arg13: memref<1x32xf32, #tpu.memory_space<vmem>>, %arg14: memref<1x32xf32, #tpu.memory_space<vmem>>, %arg15: memref<1x8x32xf32, #tpu.memory_space<vmem>>, %arg16: memref<1x4x8x8xf32, #tpu.memory_space<vmem>>) attributes {dimension_semantics = [#tpu.dimension_semantics<parallel>], iteration_bounds = array<i64: 2>, scalar_prefetch = 0 : i64, scratch_operands = 0 : i64, tpu.core_type = #tpu.core_type<tc>, window_params = [{transform_indices = @transform_0, window_bounds = array<i64: 1, 8, 32>}, {pipeline_mode = #tpu.pipeline_mode<synchronous>, transform_indices = @transform_1, window_bounds = array<i64: 32, 8>}, {pipeline_mode = #tpu.pipeline_mode<synchronous>, transform_indices = @transform_2, window_bounds = array<i64: 32, 96>}, {pipeline_mode = #tpu.pipeline_mode<synchronous>, transform_indices = @transform_3, window_bounds = array<i64: 1, 96>}, {pipeline_mode = #tpu.pipeline_mode<synchronous>, transform_indices = @transform_4, window_bounds = array<i64: 4, 8, 32>}, {pipeline_mode = #tpu.pipeline_mode<synchronous>, transform_indices = @transform_5, window_bounds = array<i64: 1, 32>}, {pipeline_mode = #tpu.pipeline_mode<synchronous>, transform_indices = @transform_6, window_bounds = array<i64: 1, 32>}, {pipeline_mode = #tpu.pipeline_mode<synchronous>, transform_indices = @transform_7, window_bounds = array<i64: 1, 32>}, {pipeline_mode = #tpu.pipeline_mode<synchronous>, transform_indices = @transform_8, window_bounds = array<i64: 32, 64>}, {pipeline_mode = #tpu.pipeline_mode<synchronous>, transform_indices = @transform_9, window_bounds = array<i64: 1, 64>}, {pipeline_mode = #tpu.pipeline_mode<synchronous>, transform_indices = @transform_10, window_bounds = array<i64: 64, 32>}, {pipeline_mode = #tpu.pipeline_mode<synchronous>, transform_indices = @transform_11, window_bounds = array<i64: 1, 32>}, {pipeline_mode = #tpu.pipeline_mode<synchronous>, transform_indices = @transform_12, window_bounds = array<i64: 1, 32>}, {pipeline_mode = #tpu.pipeline_mode<synchronous>, transform_indices = @transform_13, window_bounds = array<i64: 1, 32>}, {transform_indices = @transform_14, window_bounds = array<i64: 1, 8, 32>}, {transform_indices = @transform_15, window_bounds = array<i64: 1, 4, 8, 8>}]} {
    %c0 = arith.constant 0 : index
    %c0_0 = arith.constant 0 : index
    %c0_1 = arith.constant 0 : index
    %0 = vector.load %arg1[%c0, %c0_0, %c0_1] : memref<1x8x32xf32, #tpu.memory_space<vmem>>, vector<1x8x32xf32>
    %1 = vector.shape_cast %0 : vector<1x8x32xf32> to vector<8x32xf32>
    %c0_2 = arith.constant 0 : index
    %c0_3 = arith.constant 0 : index
    %2 = vector.load %arg3[%c0_2, %c0_3] : memref<32x96xf32, #tpu.memory_space<vmem>>, vector<32x96xf32>
    %cst = arith.constant dense<0.000000e+00> : vector<8x96xf32>
    %3 = tpu.matmul %1, %2, %cst {dimension_numbers = #tpu.dot_dimension_numbers<[1], [0], [0], [1], [0, 0, 1, 1], [], []>, precision = #tpu.contract_precision<fp32>} : vector<8x32xf32>, vector<32x96xf32>, vector<8x96xf32> -> vector<8x96xf32>
    %c0_4 = arith.constant 0 : index
    %c0_5 = arith.constant 0 : index
    %4 = vector.load %arg4[%c0_4, %c0_5] : memref<1x96xf32, #tpu.memory_space<vmem>>, vector<1x96xf32>
    %5 = vector.broadcast %4 : vector<1x96xf32> to vector<8x96xf32>
    %6 = arith.addf %3, %5 : vector<8x96xf32>
    %c0_6 = arith.constant 0 : index
    %c0_7 = arith.constant 0 : index
    %7 = vector.load %arg2[%c0_6, %c0_7] : memref<32x8xf32, #tpu.memory_space<vmem>>, vector<32x8xf32>
    %cst_8 = arith.constant dense<0.000000e+00> : vector<32x96xf32>
    %8 = tpu.matmul %7, %6, %cst_8 {dimension_numbers = #tpu.dot_dimension_numbers<[1], [0], [0], [1], [0, 0, 1, 1], [], []>, precision = #tpu.contract_precision<fp32>} : vector<32x8xf32>, vector<8x96xf32>, vector<32x96xf32> -> vector<32x96xf32>
    %9 = vector.shape_cast %8 : vector<32x96xf32> to vector<4x8x96xf32>
    %10 = tpu.iota {dimensions = array<i32: 0>} : vector<4x8x8xi32>
    %11 = tpu.iota {dimensions = array<i32: 1>} : vector<4x8x8xi32>
    %c8_i32 = arith.constant 8 : i32
    %12 = vector.broadcast %c8_i32 : i32 to vector<4x8x8xi32>
    %13 = arith.muli %10, %12 : vector<4x8x8xi32>
    %14 = arith.addi %13, %11 : vector<4x8x8xi32>
    %c4_i32 = arith.constant 4 : i32
    %c0_i32 = arith.constant 0 : i32
    %15 = arith.cmpi eq, %c4_i32, %c0_i32 : i32
    %c1_i32 = arith.constant 1 : i32
    %16 = arith.select %15, %c1_i32, %c4_i32 : i32
    %17 = vector.broadcast %16 : i32 to vector<4x8x8xi32>
    %18 = arith.remsi %14, %17 : vector<4x8x8xi32>
    %c0_i32_9 = arith.constant 0 : i32
    %19 = vector.broadcast %c0_i32_9 : i32 to vector<4x8x8xi32>
    %20 = arith.cmpi ne, %18, %19 : vector<4x8x8xi32>
    %c0_i32_10 = arith.constant 0 : i32
    %21 = vector.broadcast %c0_i32_10 : i32 to vector<4x8x8xi32>
    %22 = arith.cmpi slt, %18, %21 : vector<4x8x8xi32>
    %c0_i32_11 = arith.constant 0 : i32
    %23 = arith.cmpi slt, %16, %c0_i32_11 : i32
    %24 = vector.broadcast %23 : i1 to vector<4x8x8xi1>
    %25 = vector.broadcast %24 : vector<4x8x8xi1> to vector<4x8x8xi1>
    %26 = arith.xori %22, %25 : vector<4x8x8xi1>
    %27 = arith.andi %26, %20 : vector<4x8x8xi1>
    %28 = vector.broadcast %16 : i32 to vector<4x8x8xi32>
    %29 = arith.addi %18, %28 : vector<4x8x8xi32>
    %30 = arith.select %27, %29, %18 : vector<4x8x8xi1>, vector<4x8x8xi32>
    %cst_12 = arith.constant 0.000000e+00 : f32
    %31 = vector.broadcast %cst_12 : f32 to vector<4x8x8xf32>
    %cst_13 = arith.constant 0.000000e+00 : f32
    %32 = vector.broadcast %cst_13 : f32 to vector<4x8x8xf32>
    %cst_14 = arith.constant 0.000000e+00 : f32
    %33 = vector.broadcast %cst_14 : f32 to vector<4x8x8xf32>
    %c0_i32_15 = arith.constant 0 : i32
    %34 = vector.broadcast %c0_i32_15 : i32 to vector<4x8x8xi32>
    %35 = arith.cmpi eq, %30, %34 : vector<4x8x8xi32>
    %36 = vector.extract_strided_slice %9 {offsets = [0, 0, 0], sizes = [4, 8, 8], strides = [1, 1, 1]} : vector<4x8x96xf32> to vector<4x8x8xf32>
    %37 = arith.select %35, %36, %31 : vector<4x8x8xi1>, vector<4x8x8xf32>
    %38 = vector.extract_strided_slice %9 {offsets = [0, 0, 32], sizes = [4, 8, 8], strides = [1, 1, 1]} : vector<4x8x96xf32> to vector<4x8x8xf32>
    %39 = arith.select %35, %38, %32 : vector<4x8x8xi1>, vector<4x8x8xf32>
    %40 = vector.extract_strided_slice %9 {offsets = [0, 0, 64], sizes = [4, 8, 8], strides = [1, 1, 1]} : vector<4x8x96xf32> to vector<4x8x8xf32>
    %41 = arith.select %35, %40, %33 : vector<4x8x8xi1>, vector<4x8x8xf32>
    %c1_i32_16 = arith.constant 1 : i32
    %42 = vector.broadcast %c1_i32_16 : i32 to vector<4x8x8xi32>
    %43 = arith.cmpi eq, %30, %42 : vector<4x8x8xi32>
    %44 = vector.extract_strided_slice %9 {offsets = [0, 0, 8], sizes = [4, 8, 8], strides = [1, 1, 1]} : vector<4x8x96xf32> to vector<4x8x8xf32>
    %45 = arith.select %43, %44, %37 : vector<4x8x8xi1>, vector<4x8x8xf32>
    %46 = vector.extract_strided_slice %9 {offsets = [0, 0, 40], sizes = [4, 8, 8], strides = [1, 1, 1]} : vector<4x8x96xf32> to vector<4x8x8xf32>
    %47 = arith.select %43, %46, %39 : vector<4x8x8xi1>, vector<4x8x8xf32>
    %48 = vector.extract_strided_slice %9 {offsets = [0, 0, 72], sizes = [4, 8, 8], strides = [1, 1, 1]} : vector<4x8x96xf32> to vector<4x8x8xf32>
    %49 = arith.select %43, %48, %41 : vector<4x8x8xi1>, vector<4x8x8xf32>
    %c2_i32 = arith.constant 2 : i32
    %50 = vector.broadcast %c2_i32 : i32 to vector<4x8x8xi32>
    %51 = arith.cmpi eq, %30, %50 : vector<4x8x8xi32>
    %52 = vector.extract_strided_slice %9 {offsets = [0, 0, 16], sizes = [4, 8, 8], strides = [1, 1, 1]} : vector<4x8x96xf32> to vector<4x8x8xf32>
    %53 = arith.select %51, %52, %45 : vector<4x8x8xi1>, vector<4x8x8xf32>
    %54 = vector.extract_strided_slice %9 {offsets = [0, 0, 48], sizes = [4, 8, 8], strides = [1, 1, 1]} : vector<4x8x96xf32> to vector<4x8x8xf32>
    %55 = arith.select %51, %54, %47 : vector<4x8x8xi1>, vector<4x8x8xf32>
    %56 = vector.extract_strided_slice %9 {offsets = [0, 0, 80], sizes = [4, 8, 8], strides = [1, 1, 1]} : vector<4x8x96xf32> to vector<4x8x8xf32>
    %57 = arith.select %51, %56, %49 : vector<4x8x8xi1>, vector<4x8x8xf32>
    %c3_i32 = arith.constant 3 : i32
    %58 = vector.broadcast %c3_i32 : i32 to vector<4x8x8xi32>
    %59 = arith.cmpi eq, %30, %58 : vector<4x8x8xi32>
    %60 = vector.extract_strided_slice %9 {offsets = [0, 0, 24], sizes = [4, 8, 8], strides = [1, 1, 1]} : vector<4x8x96xf32> to vector<4x8x8xf32>
    %61 = arith.select %59, %60, %53 : vector<4x8x8xi1>, vector<4x8x8xf32>
    %62 = vector.extract_strided_slice %9 {offsets = [0, 0, 56], sizes = [4, 8, 8], strides = [1, 1, 1]} : vector<4x8x96xf32> to vector<4x8x8xf32>
    %63 = arith.select %59, %62, %55 : vector<4x8x8xi1>, vector<4x8x8xf32>
    %64 = vector.extract_strided_slice %9 {offsets = [0, 0, 88], sizes = [4, 8, 8], strides = [1, 1, 1]} : vector<4x8x96xf32> to vector<4x8x8xf32>
    %65 = arith.select %59, %64, %57 : vector<4x8x8xi1>, vector<4x8x8xf32>
    "tpu.trace_start"() <{level = 10 : i32, message = "hqd,hkd->hqk"}> : () -> ()
    %cst_17 = arith.constant dense<0.000000e+00> : vector<4x8x8xf32>
    %66 = tpu.matmul %61, %63, %cst_17 {dimension_numbers = #tpu.dot_dimension_numbers<[2], [2], [1], [1], [0, 0, 0, 1, 1, 1], [0], [0]>, precision = #tpu.contract_precision<fp32>} : vector<4x8x8xf32>, vector<4x8x8xf32>, vector<4x8x8xf32> -> vector<4x8x8xf32>
    "tpu.trace_stop"() : () -> ()
    %cst_18 = arith.constant 0.353553385 : f32
    %67 = vector.broadcast %cst_18 : f32 to vector<4x8x8xf32>
    %68 = arith.mulf %66, %67 : vector<4x8x8xf32>
    %cst_19 = arith.constant dense<0xFF800000> : vector<4x8xf32>
    %69 = vector.multi_reduction <maximumf>, %68, %cst_19 [2] : vector<4x8x8xf32> to vector<4x8xf32>
    %70 = vector.shape_cast %69 : vector<4x8xf32> to vector<4x8x1xf32>
    %71 = vector.broadcast %70 : vector<4x8x1xf32> to vector<4x8x8xf32>
    %72 = arith.subf %68, %71 : vector<4x8x8xf32>
    %73 = math.exp %72 : vector<4x8x8xf32>
    %cst_20 = arith.constant dense<0.000000e+00> : vector<4x8xf32>
    %74 = vector.multi_reduction <add>, %73, %cst_20 [2] : vector<4x8x8xf32> to vector<4x8xf32>
    %75 = vector.shape_cast %74 : vector<4x8xf32> to vector<4x8x1xf32>
    %76 = tpu.reciprocal %75 : vector<4x8x1xf32> -> vector<4x8x1xf32>
    %77 = vector.broadcast %76 : vector<4x8x1xf32> to vector<4x8x8xf32>
    %78 = arith.mulf %73, %77 : vector<4x8x8xf32>
    %c0_21 = arith.constant 0 : index
    %c0_22 = arith.constant 0 : index
    %c0_23 = arith.constant 0 : index
    %c0_24 = arith.constant 0 : index
    %79 = vector.load %arg16[%c0_21, %c0_22, %c0_23, %c0_24] : memref<1x4x8x8xf32, #tpu.memory_space<vmem>>, vector<1x4x8x8xf32>
    %80 = vector.shape_cast %79 : vector<1x4x8x8xf32> to vector<4x8x8xf32>
    %81 = vector.shape_cast %78 : vector<4x8x8xf32> to vector<1x4x8x8xf32>
    tpu.vector_store %arg16[%c0_21, %c0_22, %c0_23, %c0_24], %81 {strides = array<i32>} : memref<1x4x8x8xf32, #tpu.memory_space<vmem>>, vector<1x4x8x8xf32>,
    "tpu.trace_start"() <{level = 10 : i32, message = "hqk,hkd->hqd"}> : () -> ()
    %cst_25 = arith.constant dense<0.000000e+00> : vector<4x8x8xf32>
    %82 = tpu.matmul %68, %65, %cst_25 {dimension_numbers = #tpu.dot_dimension_numbers<[2], [1], [1], [2], [0, 0, 0, 1, 1, 2], [0], [0]>, precision = #tpu.contract_precision<fp32>} : vector<4x8x8xf32>, vector<4x8x8xf32>, vector<4x8x8xf32> -> vector<4x8x8xf32>
    "tpu.trace_stop"() : () -> ()
    %c0_26 = arith.constant 0 : index
    %c0_27 = arith.constant 0 : index
    %c0_28 = arith.constant 0 : index
    %83 = vector.load %arg5[%c0_26, %c0_27, %c0_28] : memref<4x8x32xf32, #tpu.memory_space<vmem>>, vector<4x8x32xf32>
    "tpu.trace_start"() <{level = 10 : i32, message = "hqd,hdm->hqm"}> : () -> ()
    %cst_29 = arith.constant dense<0.000000e+00> : vector<4x8x32xf32>
    %84 = tpu.matmul %82, %83, %cst_29 {dimension_numbers = #tpu.dot_dimension_numbers<[2], [1], [1], [2], [0, 0, 0, 1, 1, 2], [0], [0]>, precision = #tpu.contract_precision<fp32>} : vector<4x8x8xf32>, vector<4x8x32xf32>, vector<4x8x32xf32> -> vector<4x8x32xf32>
    "tpu.trace_stop"() : () -> ()
    %cst_30 = arith.constant dense<0.000000e+00> : vector<8x32xf32>
    %85 = vector.multi_reduction <add>, %84, %cst_30 [0] : vector<4x8x32xf32> to vector<8x32xf32>
    %c0_31 = arith.constant 0 : index
    %c0_32 = arith.constant 0 : index
    %86 = vector.load %arg6[%c0_31, %c0_32] : memref<1x32xf32, #tpu.memory_space<vmem>>, vector<1x32xf32>
    %87 = vector.broadcast %86 : vector<1x32xf32> to vector<8x32xf32>
    %88 = arith.addf %85, %87 : vector<8x32xf32>
    %89 = arith.addf %88, %1 : vector<8x32xf32>
    %c0_33 = arith.constant 0 : index
    %c0_34 = arith.constant 0 : index
    %90 = vector.load %arg7[%c0_33, %c0_34] : memref<1x32xf32, #tpu.memory_space<vmem>>, vector<1x32xf32>
    %c0_35 = arith.constant 0 : index
    %c0_36 = arith.constant 0 : index
    %91 = vector.load %arg8[%c0_35, %c0_36] : memref<1x32xf32, #tpu.memory_space<vmem>>, vector<1x32xf32>
    %cst_37 = arith.constant dense<0.000000e+00> : vector<8xf32>
    %92 = vector.multi_reduction <add>, %89, %cst_37 [1] : vector<8x32xf32> to vector<8xf32>
    %93 = vector.shape_cast %92 : vector<8xf32> to vector<8x1xf32>
    %cst_38 = arith.constant 3.200000e+01 : f32
    %94 = vector.broadcast %cst_38 : f32 to vector<8x1xf32>
    %95 = arith.divf %93, %94 : vector<8x1xf32>
    %96 = vector.broadcast %95 : vector<8x1xf32> to vector<8x32xf32>
    %97 = arith.subf %89, %96 : vector<8x32xf32>
    %98 = arith.mulf %97, %97 : vector<8x32xf32>
    %cst_39 = arith.constant dense<0.000000e+00> : vector<8xf32>
    %99 = vector.multi_reduction <add>, %98, %cst_39 [1] : vector<8x32xf32> to vector<8xf32>
    %100 = vector.shape_cast %99 : vector<8xf32> to vector<8x1xf32>
    %cst_40 = arith.constant 3.200000e+01 : f32
    %101 = vector.broadcast %cst_40 : f32 to vector<8x1xf32>
    %102 = arith.divf %100, %101 : vector<8x1xf32>
    %103 = vector.broadcast %95 : vector<8x1xf32> to vector<8x32xf32>
    %104 = arith.subf %89, %103 : vector<8x32xf32>
    %cst_41 = arith.constant 9.99999974E-6 : f32
    %105 = vector.broadcast %cst_41 : f32 to vector<8x1xf32>
    %106 = arith.addf %102, %105 : vector<8x1xf32>
    %107 = math.rsqrt %106 : vector<8x1xf32>
    %108 = vector.broadcast %107 : vector<8x1xf32> to vector<8x32xf32>
    %109 = arith.mulf %104, %108 : vector<8x32xf32>
    %110 = vector.broadcast %90 : vector<1x32xf32> to vector<8x32xf32>
    %111 = arith.mulf %109, %110 : vector<8x32xf32>
    %112 = vector.broadcast %91 : vector<1x32xf32> to vector<8x32xf32>
    %113 = arith.addf %111, %112 : vector<8x32xf32>
    %c0_42 = arith.constant 0 : index
    %c0_43 = arith.constant 0 : index
    %114 = vector.load %arg9[%c0_42, %c0_43] : memref<32x64xf32, #tpu.memory_space<vmem>>, vector<32x64xf32>
    %cst_44 = arith.constant dense<0.000000e+00> : vector<8x64xf32>
    %115 = tpu.matmul %113, %114, %cst_44 {dimension_numbers = #tpu.dot_dimension_numbers<[1], [0], [0], [1], [0, 0, 1, 1], [], []>, precision = #tpu.contract_precision<fp32>} : vector<8x32xf32>, vector<32x64xf32>, vector<8x64xf32> -> vector<8x64xf32>
    %c0_45 = arith.constant 0 : index
    %c0_46 = arith.constant 0 : index
    %116 = vector.load %arg10[%c0_45, %c0_46] : memref<1x64xf32, #tpu.memory_space<vmem>>, vector<1x64xf32>
    %117 = vector.broadcast %116 : vector<1x64xf32> to vector<8x64xf32>
    %118 = arith.addf %115, %117 : vector<8x64xf32>
    %cst_47 = arith.constant 0.000000e+00 : f32
    %119 = vector.broadcast %cst_47 : f32 to vector<8x64xf32>
    %120 = arith.maximumf %118, %119 : vector<8x64xf32>
    %c0_48 = arith.constant 0 : index
    %c0_49 = arith.constant 0 : index
    %121 = vector.load %arg11[%c0_48, %c0_49] : memref<64x32xf32, #tpu.memory_space<vmem>>, vector<64x32xf32>
    %cst_50 = arith.constant dense<0.000000e+00> : vector<8x32xf32>
    %122 = tpu.matmul %120, %121, %cst_50 {dimension_numbers = #tpu.dot_dimension_numbers<[1], [0], [0], [1], [0, 0, 1, 1], [], []>, precision = #tpu.contract_precision<fp32>} : vector<8x64xf32>, vector<64x32xf32>, vector<8x32xf32> -> vector<8x32xf32>
    %c0_51 = arith.constant 0 : index
    %c0_52 = arith.constant 0 : index
    %123 = vector.load %arg12[%c0_51, %c0_52] : memref<1x32xf32, #tpu.memory_space<vmem>>, vector<1x32xf32>
    %124 = vector.broadcast %123 : vector<1x32xf32> to vector<8x32xf32>
    %125 = arith.addf %122, %124 : vector<8x32xf32>
    %126 = arith.addf %125, %113 : vector<8x32xf32>
    %c0_53 = arith.constant 0 : index
    %c0_54 = arith.constant 0 : index
    %127 = vector.load %arg13[%c0_53, %c0_54] : memref<1x32xf32, #tpu.memory_space<vmem>>, vector<1x32xf32>
    %c0_55 = arith.constant 0 : index
    %c0_56 = arith.constant 0 : index
    %128 = vector.load %arg14[%c0_55, %c0_56] : memref<1x32xf32, #tpu.memory_space<vmem>>, vector<1x32xf32>
    %cst_57 = arith.constant dense<0.000000e+00> : vector<8xf32>
    %129 = vector.multi_reduction <add>, %126, %cst_57 [1] : vector<8x32xf32> to vector<8xf32>
    %130 = vector.shape_cast %129 : vector<8xf32> to vector<8x1xf32>
    %cst_58 = arith.constant 3.200000e+01 : f32
    %131 = vector.broadcast %cst_58 : f32 to vector<8x1xf32>
    %132 = arith.divf %130, %131 : vector<8x1xf32>
    %133 = vector.broadcast %132 : vector<8x1xf32> to vector<8x32xf32>
    %134 = arith.subf %126, %133 : vector<8x32xf32>
    %135 = arith.mulf %134, %134 : vector<8x32xf32>
    %cst_59 = arith.constant dense<0.000000e+00> : vector<8xf32>
    %136 = vector.multi_reduction <add>, %135, %cst_59 [1] : vector<8x32xf32> to vector<8xf32>
    %137 = vector.shape_cast %136 : vector<8xf32> to vector<8x1xf32>
    %cst_60 = arith.constant 3.200000e+01 : f32
    %138 = vector.broadcast %cst_60 : f32 to vector<8x1xf32>
    %139 = arith.divf %137, %138 : vector<8x1xf32>
    %140 = vector.broadcast %132 : vector<8x1xf32> to vector<8x32xf32>
    %141 = arith.subf %126, %140 : vector<8x32xf32>
    %cst_61 = arith.constant 9.99999974E-6 : f32
    %142 = vector.broadcast %cst_61 : f32 to vector<8x1xf32>
    %143 = arith.addf %139, %142 : vector<8x1xf32>
    %144 = math.rsqrt %143 : vector<8x1xf32>
    %145 = vector.broadcast %144 : vector<8x1xf32> to vector<8x32xf32>
    %146 = arith.mulf %141, %145 : vector<8x32xf32>
    %147 = vector.broadcast %127 : vector<1x32xf32> to vector<8x32xf32>
    %148 = arith.mulf %146, %147 : vector<8x32xf32>
    %149 = vector.broadcast %128 : vector<1x32xf32> to vector<8x32xf32>
    %150 = arith.addf %148, %149 : vector<8x32xf32>
    %c0_62 = arith.constant 0 : index
    %c0_63 = arith.constant 0 : index
    %c0_64 = arith.constant 0 : index
    %151 = vector.load %arg15[%c0_62, %c0_63, %c0_64] : memref<1x8x32xf32, #tpu.memory_space<vmem>>, vector<1x8x32xf32>
    %152 = vector.shape_cast %151 : vector<1x8x32xf32> to vector<8x32xf32>
    %153 = vector.shape_cast %150 : vector<8x32xf32> to vector<1x8x32xf32>
    tpu.vector_store %arg15[%c0_62, %c0_63, %c0_64], %153 {strides = array<i32>} : memref<1x8x32xf32, #tpu.memory_space<vmem>>, vector<1x8x32xf32>,
    return
  }
  func.func @transform_0(%arg0: i32) -> (i32, i32, i32) {
    %c0_i32 = arith.constant 0 : i32
    %c0_i32_0 = arith.constant 0 : i32
    %c0_i32_1 = arith.constant 0 : i32
    return %arg0, %c0_i32, %c0_i32_0 : i32, i32, i32
  }
  func.func @transform_1(%arg0: i32) -> (i32, i32) {
    %c0_i32 = arith.constant 0 : i32
    %c0_i32_0 = arith.constant 0 : i32
    %c0_i32_1 = arith.constant 0 : i32
    return %c0_i32, %c0_i32_0 : i32, i32
  }
  func.func @transform_2(%arg0: i32) -> (i32, i32) {
    %c0_i32 = arith.constant 0 : i32
    %c0_i32_0 = arith.constant 0 : i32
    %c0_i32_1 = arith.constant 0 : i32
    return %c0_i32, %c0_i32_0 : i32, i32
  }
  func.func @transform_3(%arg0: i32) -> (i32, i32) {
    %c0_i32 = arith.constant 0 : i32
    %c0_i32_0 = arith.constant 0 : i32
    %c0_i32_1 = arith.constant 0 : i32
    return %c0_i32, %c0_i32_0 : i32, i32
  }
  func.func @transform_4(%arg0: i32) -> (i32, i32, i32) {
    %c0_i32 = arith.constant 0 : i32
    %c0_i32_0 = arith.constant 0 : i32
    %c0_i32_1 = arith.constant 0 : i32
    %c0_i32_2 = arith.constant 0 : i32
    return %c0_i32, %c0_i32_0, %c0_i32_1 : i32, i32, i32
  }
  func.func @transform_5(%arg0: i32) -> (i32, i32) {
    %c0_i32 = arith.constant 0 : i32
    %c0_i32_0 = arith.constant 0 : i32
    %c0_i32_1 = arith.constant 0 : i32
    return %c0_i32, %c0_i32_0 : i32, i32
  }
  func.func @transform_6(%arg0: i32) -> (i32, i32) {
    %c0_i32 = arith.constant 0 : i32
    %c0_i32_0 = arith.constant 0 : i32
    %c0_i32_1 = arith.constant 0 : i32
    return %c0_i32, %c0_i32_0 : i32, i32
  }
  func.func @transform_7(%arg0: i32) -> (i32, i32) {
    %c0_i32 = arith.constant 0 : i32
    %c0_i32_0 = arith.constant 0 : i32
    %c0_i32_1 = arith.constant 0 : i32
    return %c0_i32, %c0_i32_0 : i32, i32
  }
  func.func @transform_8(%arg0: i32) -> (i32, i32) {
    %c0_i32 = arith.constant 0 : i32
    %c0_i32_0 = arith.constant 0 : i32
    %c0_i32_1 = arith.constant 0 : i32
    return %c0_i32, %c0_i32_0 : i32, i32
  }
  func.func @transform_9(%arg0: i32) -> (i32, i32) {
    %c0_i32 = arith.constant 0 : i32
    %c0_i32_0 = arith.constant 0 : i32
    %c0_i32_1 = arith.constant 0 : i32
    return %c0_i32, %c0_i32_0 : i32, i32
  }
  func.func @transform_10(%arg0: i32) -> (i32, i32) {
    %c0_i32 = arith.constant 0 : i32
    %c0_i32_0 = arith.constant 0 : i32
    %c0_i32_1 = arith.constant 0 : i32
    return %c0_i32, %c0_i32_0 : i32, i32
  }
  func.func @transform_11(%arg0: i32) -> (i32, i32) {
    %c0_i32 = arith.constant 0 : i32
    %c0_i32_0 = arith.constant 0 : i32
    %c0_i32_1 = arith.constant 0 : i32
    return %c0_i32, %c0_i32_0 : i32, i32
  }
  func.func @transform_12(%arg0: i32) -> (i32, i32) {
    %c0_i32 = arith.constant 0 : i32
    %c0_i32_0 = arith.constant 0 : i32
    %c0_i32_1 = arith.constant 0 : i32
    return %c0_i32, %c0_i32_0 : i32, i32
  }
  func.func @transform_13(%arg0: i32) -> (i32, i32) {
    %c0_i32 = arith.constant 0 : i32
    %c0_i32_0 = arith.constant 0 : i32
    %c0_i32_1 = arith.constant 0 : i32
    return %c0_i32, %c0_i32_0 : i32, i32
  }
  func.func @transform_14(%arg0: i32) -> (i32, i32, i32) {
    %c0_i32 = arith.constant 0 : i32
    %c0_i32_0 = arith.constant 0 : i32
    %c0_i32_1 = arith.constant 0 : i32
    return %arg0, %c0_i32, %c0_i32_0 : i32, i32, i32
  }
  func.func @transform_15(%arg0: i32) -> (i32, i32, i32, i32) {
    %c0_i32 = arith.constant 0 : i32
    %c0_i32_0 = arith.constant 0 : i32
    %c0_i32_1 = arith.constant 0 : i32
    %c0_i32_2 = arith.constant 0 : i32
    return %arg0, %c0_i32, %c0_i32_0, %c0_i32_1 : i32, i32, i32, i32
  }
}

</mosaic_0001>

<bundles_post_ra>
// kernel: encoder_layer.1
= control target key start
LH: loop header
LB: loop body
LE: loop exit
PB: predicated region body
PF: predicated region fallthrough
CT: control target
= control target key end

     0   :  { %s4548_s0 = inlined_call_operand.hbm [shape: f32[2,8,32], index: 0, kind: input, shape index: {}]   ;;  %s4549_s1 = inlined_call_operand.vmem [shape: f32[32,8], index: 1, kind: input, shape index: {}]   ;;  %s4550_s2 = inlined_call_operand.vmem [shape: f32[32,96], index: 2, kind: input, shape index: {}]   ;;  %s4551_s3 = inlined_call_operand.vmem [shape: f32[1,96], index: 3, kind: input, shape index: {}]   ;;  %s4552_s4 = inlined_call_operand.vmem [shape: f32[4,8,32], index: 4, kind: input, shape index: {}]   ;;  %s4553_s5 = inlined_call_operand.vmem [shape: f32[1,32], index: 5, kind: input, shape index: {}]   ;;  %s4554_s6 = inlined_call_operand.vmem [shape: f32[1,32], index: 6, kind: input, shape index: {}]   ;;  %s4555_s7 = inlined_call_operand.vmem [shape: f32[1,32], index: 7, kind: input, shape index: {}]   ;;  %s4556_s8 = inlined_call_operand.vmem [shape: f32[32,64], index: 8, kind: input, shape index: {}]   ;;  %s4557_s9 = inlined_call_operand.vmem [shape: f32[1,64], index: 9, kind: input, shape index: {}]   ;;  %s4558_s10 = inlined_call_operand.vmem [shape: f32[64,32], index: 10, kind: input, shape index: {}]   ;;  %s4559_s11 = inlined_call_operand.vmem [shape: f32[1,32], index: 11, kind: input, shape index: {}]   ;;  %s4560_s12 = inlined_call_operand.vmem [shape: f32[1,32], index: 12, kind: input, shape index: {}]   ;;  %s4561_s13 = inlined_call_operand.vmem [shape: f32[1,32], index: 13, kind: input, shape index: {}]   ;;  %s4562_s14 = inlined_call_operand.hbm [shape: f32[2,8,32], index: 14, kind: output, shape index: {0}]   ;;  %s4563_s15 = inlined_call_operand.hbm [shape: f32[2,4,8,8], index: 15, kind: output, shape index: {1}]  }
   0x1   :  { %4574 = sst [smem:[#allocation17_spill]] %s4548_s0 }
   0x2   :  { %4575 = sst [smem:[#allocation18_spill]] %s4549_s1 }
   0x3   :  { %4576 = sst [smem:[#allocation19_spill]] %s4561_s13 }
   0x4   :  { %4577 = sst [smem:[#allocation20_spill]] %s4562_s14 }
   0x5   :  { %4578 = sst [smem:[#allocation21_spill]] %s4563_s15 }
   0x6   :  { %21 = vsyncpa [#allocation3], 0 }
   0x7   :  { %23 = vsyncpa [#allocation3 + $0x1], 0 }
   0x8   :  { %24 = vsyncpa [#allocation4], 0 }
   0x9   :  { %26 = vsyncpa [#allocation4 + $0x1], 0 }
   0xa   :  { %27 = vsyncpa [#allocation7], 0 }
   0xb   :  { %29 = vsyncpa [#allocation7 + $0x1], 0  ;;  %s4040_s18 = smov 0   ;;  %s4042_s19 = smov 0  }
   0xc   :  { %s4044_s20 = smov 0   ;;  %s4046_s21 = smov 0  }
   0xd LB: > { %4579 = sst [smem:[#allocation11_spill]] %s3940_s18  ;;  %s4061_s22 = sadd.s32 4294967295, %s3952_s21   ;;  %s3952_s21 = sphi %s4046_s21, %s4600_s21   ;;  %s3948_s20 = sphi %s4044_s20, %s4602_s20   ;;  %s3944_s19 = sphi %s4042_s19, %s4604_s19   ;;  %s3940_s18 = sphi %s4040_s18, %s4603_s18  }
   0xe   : > { %4580 = sst [smem:[#allocation12_spill]] %s3948_s20  ;;  %s3719_s23 = sadd.s32 4294967294, %s3952_s21  }
   0xf   : > { %s4065_s24 = sadd.s32 1, %s3952_s21   ;;  %s42_s25 = sadd.s32 1, %s3948_s20 }
  0x10   : > { %4581 = sst [smem:[#allocation13_spill]] %s4065_s24  ;;  %s39_s26 = ssub.s32 %s3952_s21, %s4065_s24 }
  0x11   : > { %p49_p0 = scmp.ne.s32.totalorder %s3948_s20, %s3944_s19  ;;  %p40_p1 = scmp.eq.s32.totalorder %s39_s26, 0 }
  0x12   : > { %p50_p2 = scmp.eq.s32.totalorder %s3952_s21, 0  ;;  %p55_p3 = scmp.ne.s32.totalorder %s3944_s19, %s3940_s18 }
  0x13   : > { %p56_p4 = scmp.eq.s32.totalorder %s4061_s22, 0  ;;  %p352_p7 = scmp.eq.s32.totalorder %s4061_s22, 1 }
  0x14   : > { %s4077_s27 = scalar_select %p40_p1, %s3948_s20, %s42_s25  }
  0x15   : > { %p4079_p5 = por %p50_p2, %p49_p0  ;;  %p4083_p6 = por %p56_p4, %p55_p3 }
  0x16   : > { %4582 = sst [smem:[#allocation14_spill]] %s4077_s27  ;;  %p358_p8 = scmp.eq.s32.totalorder %s3719_s23, 1 }
  0x17   : > { %p3753_p10 = scmp.lt.s32.totalorder %s3952_s21, 2  ;;  %p4090_p11 = por %p352_p7, %p49_p0 }
  0x18   : > { %p4094_p12 = por %p358_p8, %p55_p3  ;;  %s443_s17 = sand.u32 1, %s3948_s20  }
  0x19   : > { %s4585_s30 = scalar_select %p4090_p11, 1, 0 }
  0x1a   : > { %s4587_s16 = scalar_select %p4094_p12, 1, 0 }
  0x1b   : > { %4586 = sst [smem:[#allocation15_spill]] %s4585_s30  ;;  %s3723_s25 = sshll.u32 %s3952_s21, 3 }
  0x1c   : > { %4588 = sst [smem:[#allocation16_spill]] %s4587_s16  ;;  %s3722_s26 = sshll.u32 %s443_s17, 3 }
  0x1d   : > { %s4589_s0 = sld [smem:[#allocation17_spill]]  ;;  %s447_s23 = scalar_lea.vmem [#allocation2], %s3722_s26 }
  0x1e   : > { %s455_s13 = sshll.u32 %s447_s23, 4  ;;  %p4105_p13 = pnand %p3753_p10, %p4079_p5  ;;  %s456_s13 = int_to_ptr.vmem [resolvable:$true] %s455_s13 }
  0x1f   : > { %p3724_p0 = scmp.ge.s32.totalorder %s3952_s21, 1  ;;  %p460_p1 = scmp.lt.s32.totalorder %s3952_s21, 3 }
  0x20   : > { %s444_s20 = scalar_lea.sflag [#allocation3], %s443_s17  ;;  %p3828_p3 = pneg %p4105_p13 }
  0x23   : > { %s451_s18 = scalar_lea.hbm %s4589_s0, %s3723_s25  ;;  %s3831_s27 = scalar_lea.hbm %s4589_s0, 16 }
  0x24   : > { %s453_s15 = sshll.u32 %s451_s18, 4  ;;  %s454_s15 = int_to_ptr.hbm [resolvable:$true] %s453_s15 }
  0x25   : > { %s3824_s16 = sshra.s32 %s454_s15, 4  ;;  %s3825_s16 = int_to_ptr.hbm [resolvable:$true] %s3824_s16 }
  0x26   : > { %s3826_s30 = scalar_lea.hbm %s3825_s16, 8  ;;  %p3832_p5 = scmp.lt.s32.totalorder %s3825_s16, %s4589_s0 }
  0x27   : > { %p3827_p2 = scmp.ne.s32.totalorder %s3825_s16, %s3826_s30  ;;  %p3833_p8 = scmp.lt.s32.totalorder %s3831_s27, %s3826_s30 }
  0x29   : > { %p3829_p4 = pnand %p3828_p3, %p3827_p2  ;;  %p3834_p10 = por %p3833_p8, %p3832_p5 }
  0x2b   : > { %p3830_p7 = pneg %p3829_p4 }
  0x2d   : > { %p3835_p9 = pnand %p3834_p10, %p3830_p7 }
  0x2f   : > { %3838 = shalt.err (!%p3835_p9)
}
  0x30   : > { %3745 = dma.hbm_to_vmem [thread:$0]  (!%p4105_p13), %s454_s15, 128, %s456_s13, %s444_s20  }
  0x31   : > { %p461_p2 = pnand %p3724_p0, %p460_p1 }
  0x32   : > { %s4126_s17 = sand.u32 (!%p461_p2), 1, %s3944_s19  }
  0x33   : > { %464 = sbr.rel (%p461_p2) target bundleno = 2239 (0x8bf), region = 76  ;;  %s3725_s30 = sshll.u32 (!%p461_p2), %s4126_s17, 3 }
  0x34   : > { %s467_s16 = scalar_lea.sflag (!%p461_p2), [#allocation3], %s4126_s17  ;;  %s4132_s26 = scalar_lea.vmem (!%p461_p2), [#allocation2], %s3725_s30 }
  0x38   : > { %3927 = dma.done.wait (%p4083_p6), %s467_s16, 128  }
  0x39   : > { %3929 = vsyncadd (%p4083_p6), %s467_s16, 4294967168  ;;  %vm532_vm0 = vcmask 261120   ;;  %v527_v0 = vld [vmem:[%s4550_s2 + $0x18] sm:$0xff]  ;;  %v526_v1 = vld [vmem:[%s4550_s2 + $0x10] sm:$0xff]  ;;  %s4591_s1 = sld [smem:[#allocation18_spill]]  ;;  %vm725_vm1 = vcmask 64512  }
  0x3a   : > { %v525_v2 = vld [vmem:[%s4550_s2 + $0x8] sm:$0xff]  ;;  %v548_v3 = vand.u32 4294901760, %v527_v0  ;;  %v550_v4 = vand.u32 4294901760, %v526_v1  ;;  %v524_v6 = vld [vmem:[%s4550_s2] sm:$0xff]  ;;  %s4573_s24 = smov 8   ;;  %s3955_s29 = smov 72  }
  0x3b   : > { %v552_v5 = vand.u32 4294901760, %v525_v2  ;;  %v523_v7 = vld [vmem:[%s4132_s26] sm:$0xff]  ;;  %v554_v8 = vand.u32 4294901760, %v524_v6  ;;  %s3956_s27 = smov 104   ;;  %s3957_s28 = smov 40  }
  0x3c   : > { %v534_v9 = vsel %vm532_vm0, %v523_v7, 0  ;;  %549 = vmatpush.msra.mxu2 %v548_v3  ;;  %v578_v10 = vsub.f32 %v527_v0, %v548_v3  ;;  %v584_v12 = vsub.f32 %v526_v1, %v550_v4  ;;  %709 = vmatpush.msra.mxu1 %v548_v3  ;;  %v3793_v32 = vld [vmem:[%s4551_s3] ss:$0 sm:$0xff]  ;;  %s4592_s14 = sld [smem:[#allocation20_spill]]  ;;  %s3735_s20 = sshll.u32 %s4061_s22, 5 }
  0x3d   : > { %v556_v11 = vand.u32 4294901760, %v534_v9  ;;  %v590_v13 = vsub.f32 %v525_v2, %v552_v5  ;;  %v596_v14 = vsub.f32 %v524_v6, %v554_v8  ;;  %s4594_s13 = sld [smem:[#allocation21_spill]] }
  0x3e   : > { %551 = vmatpush.msra.mxu2 %v550_v4  ;;  %v579_v15 = vand.u32 4294901760, %v578_v10  ;;  %v585_v17 = vand.u32 4294901760, %v584_v12  ;;  %711 = vmatpush.msra.mxu1 %v550_v4 }
  0x3f   : > { %v557_v16 = vsub.f32 %v534_v9, %v556_v11  ;;  %v591_v18 = vand.u32 4294901760, %v590_v13  ;;  %v597_v19 = vand.u32 4294901760, %v596_v14  ;;  %v721_v31 = vld [vmem:[%s4591_s1] sm:$0xff]  ;;  %v722_v38 = vld [vmem:[%s4591_s1 + $0x8] sm:$0xff]  ;;  %v723_v48 = vld [vmem:[%s4591_s1 + $0x10] sm:$0xff] }
  0x40   : > { %553 = vmatpush.msra.mxu2 %v552_v5  ;;  %v580_v20 = vsub.f32 %v578_v10, %v579_v15  ;;  %v586_v22 = vsub.f32 %v584_v12, %v585_v17  ;;  %678 = vmatpush.msra.mxu0 %v579_v15  ;;  %v727_v34 = vsel %vm725_vm1, %v721_v31, 0  ;;  %v730_v41 = vsel %vm725_vm1, %v722_v38, 0  ;;  %v724_v60 = vld [vmem:[%s4591_s1 + $0x18] sm:$0xff] }
  0x41   : > { %v558_v21 = vand.u32 4294901760, %v557_v16  ;;  %v592_v23 = vsub.f32 %v590_v13, %v591_v18  ;;  %713 = vmatpush.msra.mxu1 %v552_v5  ;;  %v598_v27 = vsub.f32 %v596_v14, %v597_v19  ;;  %v4159_v35 = vand.u32 4294901760, %v727_v34 }
  0x42   : > { %555 = vmatpush.msra.mxu2 %v554_v8  ;;  %v581_v24 = vand.u32 4294901760, %v580_v20  ;;  %v587_v26 = vand.u32 4294901760, %v586_v22  ;;  %682 = vmatpush.msra.mxu0 %v585_v17  ;;  %v763_v44 = vand.u32 4294901760, %v730_v41  ;;  %v733_v54 = vsel %vm725_vm1, %v723_v48, 0  ;;  %s3874_s0 = scalar_lea.hbm %s4592_s14, 16 }
  0x43   : > { %v559_v25 = vsub.f32 %v557_v16, %v558_v21  ;;  %715 = vmatpush.msra.mxu1 %v554_v8  ;;  %v593_v29 = vand.u32 4294901760, %v592_v23  ;;  %v599_v30 = vand.u32 4294901760, %v598_v27  ;;  %v756_v39 = vsub.f32 %v727_v34, %v4159_v35 }
  0x44   : > { %620 = vmatpush.msrb.mxu2 %v578_v10  ;;  %582 = vmatpush.msra.mxu3 %v581_v24  ;;  %v764_v52 = vsub.f32 %v730_v41, %v763_v44  ;;  %v771_v58 = vand.u32 4294901760, %v733_v54  ;;  %v736_v1 = vsel %vm725_vm1, %v724_v60, 0  ;;  %v977_v22 = vlaneseq }
  0x45   : > { %v560_v28 = vand.u32 4294901760, %v559_v25  ;;  %686 = vmatpush.msra.mxu0 %v591_v18  ;;  %717 = vmatmul.f32.vlgmr.msra.gmra.mxu1 %v556_v11  ;;  %v757_v43 = vand.u32 4294901760, %v756_v39 }
  0x46   : > { %623 = vmatpush.msrb.mxu2 %v584_v12  ;;  %588 = vmatpush.msra.mxu3 %v587_v26  ;;  %v765_v57 = vand.u32 4294901760, %v764_v52  ;;  %v772_v63 = vsub.f32 %v733_v54, %v771_v58  ;;  %v978_v26 = vshrl.u32 %v977_v22, 7 }
  0x47   : > { %561 = vmatmul.f32.vlgmr.msra.gmra.mxu2 %v560_v28  ;;  %690 = vmatpush.msra.mxu0 %v597_v19  ;;  %v758_v51 = vsub.f32 %v756_v39, %v757_v43 }
  0x48   : > { %626 = vmatpush.msrb.mxu2 %v590_v13  ;;  %594 = vmatpush.msra.mxu3 %v593_v29  ;;  %v766_v62 = vsub.f32 %v764_v52, %v765_v57  ;;  %v4177_v29 = vand.u32 3, %v978_v26 }
  0x49   : > { %692 = vmatmul.f32.vlgmr.msra.gmra.mxu0 %v556_v11  ;;  %v759_v56 = vand.u32 4294901760, %v758_v51 }
  0x4a   : > { %629 = vmatpush.msrb.mxu2 %v596_v14  ;;  %600 = vmatpush.msra.mxu3 %v599_v30  ;;  %vm1030_vm2 = vcmp.eq.s32.totalorder %v4177_v29, 0  ;;  %vm1038_vm6 = vcmp.eq.s32.totalorder %v4177_v29, 1  ;;  %vm1062_vm11 = vcmp.eq.s32.totalorder %v4177_v29, 2  ;;  %vm1086_vm14 = vcmp.eq.s32.totalorder %v4177_v29, 3 }
  0x4b   : > { %602 = vmatmul.f32.vlgmr.msra.gmra.mxu3 %v556_v11 }
  0x4c   : > { %649 = vmatpush.msrb.mxu3 %v548_v3  ;;  %v767_v3 = vand.u32 4294901760, %v766_v62 }
  0x4e   : > { %651 = vmatpush.msrb.mxu3 %v550_v4  ;;  %v773_v4 = vand.u32 4294901760, %v772_v63 }
  0x4f   : > { %632 = vmatmul.f32.vlgmr.msrb.gmra.mxu2 %v557_v16 }
  0x50   : > { %653 = vmatpush.msrb.mxu3 %v552_v5  ;;  %v779_v5 = vand.u32 4294901760, %v736_v1  ;;  %v774_v7 = vsub.f32 %v772_v63, %v773_v4 }
  0x52   : > { %655 = vmatpush.msrb.mxu3 %v554_v8  ;;  %v780_v8 = vsub.f32 %v736_v1, %v779_v5  ;;  %v775_v9 = vand.u32 4294901760, %v774_v7 }
  0x53   : > { %659 = vmatmul.f32.vlgmr.msrb.gmra.mxu3 %v558_v21 }
  0x54   : > { %v781_v10 = vand.u32 4294901760, %v780_v8 }
  0x56   : > { %v782_v11 = vsub.f32 %v780_v8, %v781_v10 }
  0x58   : > { %v783_v12 = vand.u32 4294901760, %v782_v11 }
  0xc2   : > { %v718_v50 = vpop.f32.mrf.mxu1 }
  0xc6   : > { %v693_v47 = vpop.f32.mrf.mxu0 }
  0xca   : > { %v562_v33 = vpop.f32.mrf.mxu2 }
  0xcb   : > { %v563_v36 = vadd.f32 %v3793_v32, %v562_v33 }
  0xce   : > { %v603_v37 = vpop.f32.mrf.mxu3 }
  0xcf   : > { %v604_v40 = vadd.f32 %v603_v37, %v563_v36  ;;  %v979_v36 = vadd.s32 8, %v978_v26 }
  0xd1   : > { %v4184_v41 = vand.u32 3, %v979_v36 }
  0xd2   : > { %v633_v42 = vpop.f32.mrf.mxu2 }
  0xd3   : > { %v634_v45 = vadd.f32 %v633_v42, %v604_v40  ;;  %vm1031_vm3 = vcmp.eq.s32.totalorder %v4184_v41, 0  ;;  %vm1039_vm7 = vcmp.eq.s32.totalorder %v4184_v41, 1  ;;  %vm1063_vm10 = vcmp.eq.s32.totalorder %v4184_v41, 2 }
  0xd4   : > { %vm1087_vm15 = vcmp.eq.s32.totalorder %v4184_v41, 3 }
  0xd6   : > { %v660_v46 = vpop.f32.mrf.mxu3 }
  0xd7   : > { %v661_v49 = vadd.f32 %v660_v46, %v634_v45 }
  0xd9   : > { %v694_v53 = vadd.f32 %v693_v47, %v661_v49  ;;  %v980_v47 = vadd.s32 16, %v978_v26 }
  0xdb   : > { %v719_v55 = vadd.f32 %v718_v50, %v694_v53 }
  0xdd   : > { %v753_v59 = vand.u32 4294901760, %v719_v55 }
  0xdf   : > { %v804_v61 = vsub.f32 %v719_v55, %v753_v59  ;;  %754 = vmatpush.msra.mxu2 %v753_v59  ;;  %881 = vmatpush.msrb.mxu1 %v753_v59 }
  0xe0   : > { %760 = vmatmul.f32.vlgmr.msra.gmra.mxu2 %v759_v56  ;;  %885 = vmatmul.f32.vlgmr.msrb.gmra.mxu1 %v757_v43 }
  0xe1   : > { %843 = vmatpush.msrb.mxu0 %v804_v61  ;;  %v805_v0 = vand.u32 4294901760, %v804_v61 }
  0xe2   : > { %846 = vmatmul.f32.vlgmr.msrb.gmra.mxu0 %v756_v39 }
  0xe3   : > { %925 = vmatpush.msrb.mxu2 %v805_v0  ;;  %v806_v2 = vsub.f32 %v804_v61, %v805_v0 }
  0xe5   : > { %v807_v6 = vand.u32 4294901760, %v806_v2 }
  0xe7   : > { %808 = vmatpush.msra.mxu3 %v807_v6 }
  0xe8   : > { %768 = vmatmul.f32.gmra.mxu2 %v767_v3  ;;  %810 = vmatmul.f32.vlgmr.msra.gmra.mxu3 %v4159_v35 }
  0xe9   : > { %959 = vmatpush.msrb.mxu3 %v753_v59  ;;  %891 = vmatmul.f32.gmra.mxu1 %v765_v57 }
  0xea   : > { %851 = vmatmul.f32.gmra.mxu0 %v764_v52  ;;  %v4191_v52 = vand.u32 3, %v980_v47 }
  0xec   : > { %vm1032_vm4 = vcmp.eq.s32.totalorder %v4191_v52, 0  ;;  %vm1040_vm8 = vcmp.eq.s32.totalorder %v4191_v52, 1  ;;  %vm1064_vm12 = vcmp.eq.s32.totalorder %v4191_v52, 2 }
  0xf0   : > { %776 = vmatmul.f32.gmra.mxu2 %v775_v9  ;;  %814 = vmatmul.f32.gmra.mxu3 %v763_v44 }
  0xf1   : > { %897 = vmatmul.f32.gmra.mxu1 %v773_v4 }
  0xf2   : > { %856 = vmatmul.f32.gmra.mxu0 %v772_v63 }
  0xf8   : > { %784 = vmatmul.f32.gmra.mxu2 %v783_v12  ;;  %818 = vmatmul.f32.gmra.mxu3 %v771_v58 }
  0xf9   : > { %903 = vmatmul.f32.gmra.mxu1 %v781_v10 }
  0xfa   : > { %861 = vmatmul.f32.gmra.mxu0 %v780_v8 }
 0x100   : > { %822 = vmatmul.f32.gmra.mxu3 %v779_v5  ;;  %927 = vmatmul.f32.vlgmr.msrb.gmra.mxu2 %v4159_v35 }
 0x108   : > { %931 = vmatmul.f32.gmra.mxu2 %v763_v44  ;;  %961 = vmatmul.f32.vlgmr.msrb.gmra.mxu3 %v4159_v35 }
 0x110   : > { %935 = vmatmul.f32.gmra.mxu2 %v771_v58  ;;  %965 = vmatmul.f32.gmra.mxu3 %v763_v44 }
 0x118   : > { %939 = vmatmul.f32.gmra.mxu2 %v779_v5  ;;  %969 = vmatmul.f32.gmra.mxu3 %v771_v58  ;;  %v981_v58 = vadd.s32 24, %v978_v26 }
 0x11a   : > { %v1007_v0 = vand.u32 3, %v981_v58 }
 0x11c   : > { %vm1033_vm5 = vcmp.eq.s32.totalorder %v1007_v0, 0  ;;  %vm1041_vm9 = vcmp.eq.s32.totalorder %v1007_v0, 1  ;;  %vm1065_vm13 = vcmp.eq.s32.totalorder %v1007_v0, 2 }
 0x120   : > { %973 = vmatmul.f32.gmra.mxu3 %v779_v5 }
 0x15d   : > { %v886_v21 = vpop.f32.mrf.mxu1 }
 0x15f   : > { %v847_v18 = vpop.f32.mrf.mxu0 }
 0x163   : > { %v761_v13 = vpop.f32.mrf.mxu2 }
 0x166   : > { %v892_v32 = vpop.f32.mrf.mxu1 }
 0x167   : > { %v852_v28 = vpop.f32.mrf.mxu0 }
 0x16b   : > { %v769_v14 = vpop.f32.mrf.mxu2  ;;  %v811_v15 = vpop.f32.mrf.mxu3 }
 0x16c   : > { %v812_v23 = vadd.f32 %v811_v15, %v761_v13 }
 0x16e   : > { %v848_v27 = vadd.f32 %v847_v18, %v812_v23  ;;  %v898_v45 = vpop.f32.mrf.mxu1 }
 0x16f   : > { %v857_v40 = vpop.f32.mrf.mxu0 }
 0x170   : > { %v887_v30 = vadd.f32 %v886_v21, %v848_v27 }
 0x173   : > { %v777_v16 = vpop.f32.mrf.mxu2  ;;  %v815_v17 = vpop.f32.mrf.mxu3 }
 0x174   : > { %v816_v31 = vadd.f32 %v815_v17, %v769_v14 }
 0x176   : > { %v853_v37 = vadd.f32 %v852_v28, %v816_v31  ;;  %v904_v61 = vpop.f32.mrf.mxu1 }
 0x177   : > { %v862_v55 = vpop.f32.mrf.mxu0 }
 0x178   : > { %v893_v42 = vadd.f32 %v892_v32, %v853_v37 }
 0x17b   : > { %v785_v19 = vpop.f32.mrf.mxu2  ;;  %v819_v20 = vpop.f32.mrf.mxu3 }
 0x17c   : > { %v820_v43 = vadd.f32 %v819_v20, %v777_v16 }
 0x17e   : > { %v858_v48 = vadd.f32 %v857_v40, %v820_v43 }
 0x180   : > { %v899_v53 = vadd.f32 %v898_v45, %v858_v48 }
 0x183   : > { %v823_v24 = vpop.f32.mrf.mxu3  ;;  %v928_v25 = vpop.f32.mrf.mxu2 }
 0x184   : > { %v929_v33 = vadd.f32 %v928_v25, %v887_v30  ;;  %v824_v54 = vadd.f32 %v823_v24, %v785_v19 }
 0x186   : > { %v863_v59 = vadd.f32 %v862_v55, %v824_v54 }
 0x188   : > { %v905_v1 = vadd.f32 %v904_v61, %v863_v59 }
 0x18b   : > { %v932_v34 = vpop.f32.mrf.mxu2  ;;  %v962_v35 = vpop.f32.mrf.mxu3 }
 0x18c   : > { %v4180_v38 = vadd.f32 %v962_v35, %v929_v33  ;;  %v933_v44 = vadd.f32 %v932_v34, %v893_v42 }
 0x18e   : > { %v1034_v39 = vsel %vm1030_vm2, %v4180_v38, 0.0  ;;  %vm1088_vm2 = vcmp.eq.s32.totalorder %v4191_v52, 3 }
 0x18f   : > { %1046 = vrot.lane.b32.xlu0 %v1034_v39, %s4573_s24 }
 0x193   : > { %v966_v46 = vpop.f32.mrf.mxu3  ;;  %v936_v50 = vpop.f32.mrf.mxu2 }
 0x194   : > { %v4187_v49 = vadd.f32 %v966_v46, %v933_v44  ;;  %v937_v56 = vadd.f32 %v936_v50, %v899_v53 }
 0x196   : > { %v1035_v51 = vsel %vm1031_vm3, %v4187_v49, 0.0  ;;  %vm1089_vm3 = vcmp.eq.s32.totalorder %v1007_v0, 3 }
 0x197   : > { %1048 = vrot.lane.b32.xlu0 %v1035_v51, %s4573_s24 }
 0x19b   : > { %v970_v57 = vpop.f32.mrf.mxu3  ;;  %v940_v63 = vpop.f32.mrf.mxu2 }
 0x19c   : > { %v971_v60 = vadd.f32 %v970_v57, %v937_v56  ;;  %v941_v2 = vadd.f32 %v940_v63, %v905_v1 }
 0x19e   : > { %v1036_v62 = vsel %vm1032_vm4, %v971_v60, 0.0 }
 0x19f   : > { %1050 = vrot.lane.b32.xlu1 %v1036_v62, %s4573_s24 }
 0x1a3   : > { %v974_v3 = vpop.f32.mrf.mxu3 }
 0x1a4   : > { %v975_v4 = vadd.f32 %v974_v3, %v941_v2 }
 0x1a6   : > { %v1037_v5 = vsel %vm1033_vm5, %v975_v4, 0.0 }
 0x1a7   : > { %1052 = vrot.lane.b32.xlu2 %v1037_v5, %s4573_s24 }
 0x201   : > { %v1047_v6 = vpop.permute.xlu0 %1046  ;;  %v1053_v10 = vpop.permute.xlu2 %1052 }
 0x202   : > { %v1058_v7 = vsel %vm1038_vm6, %v4180_v38, %v1047_v6  ;;  %v1061_v13 = vsel %vm1041_vm9, %v975_v4, %v1053_v10 }
 0x203   : > { %1070 = vrot.lane.b32.xlu1 %v1058_v7, %s4573_s24 }
 0x209   : > { %v1049_v8 = vpop.permute.xlu0 %1048 }
 0x20a   : > { %v1059_v9 = vsel %vm1039_vm7, %v4187_v49, %v1049_v8 }
 0x20b   : > { %1072 = vrot.lane.b32.xlu2 %v1059_v9, %s4573_s24 }
 0x211   : > { %v1051_v11 = vpop.permute.xlu1 %1050 }
 0x212   : > { %v1060_v12 = vsel %vm1040_vm8, %v971_v60, %v1051_v11 }
 0x213   : > { %1074 = vrot.lane.b32.xlu0 %v1060_v12, %s4573_s24  ;;  %1076 = vrot.lane.b32.xlu2 %v1061_v13, %s4573_s24 }
 0x265   : > { %v1073_v14 = vpop.permute.xlu2 %1072 }
 0x266   : > { %v1083_v15 = vsel %vm1063_vm10, %v4187_v49, %v1073_v14 }
 0x267   : > { %1096 = vrot.lane.b32.xlu0 %v1083_v15, %s4573_s24 }
 0x26d   : > { %v1077_v20 = vpop.permute.xlu2 %1076 }
 0x26e   : > { %v1085_v21 = vsel %vm1065_vm13, %v975_v4, %v1077_v20 }
 0x275   : > { %v1071_v16 = vpop.permute.xlu1 %1070 }
 0x276   : > { %v1082_v17 = vsel %vm1062_vm11, %v4180_v38, %v1071_v16 }
 0x277   : > { %1094 = vrot.lane.b32.xlu1 %v1082_v17, %s4573_s24 }
 0x285   : > { %v1075_v18 = vpop.permute.xlu0 %1074 }
 0x286   : > { %v1084_v19 = vsel %vm1064_vm12, %v971_v60, %v1075_v18  ;;  %vm3303_vm12 = vcmask 523264  }
 0x287   : > { %1098 = vrot.lane.b32.xlu1 %v1084_v19, %s4573_s24 }
 0x28f   : > { %1100 = vrot.lane.b32.xlu1 %v1085_v21, %s4573_s24  ;;  %s4493_s24 = scalar_lea.hbm %s4594_s13, %s3735_s20  ;;  %s3579_s20 = scalar_lea.sflag [#allocation4], %s4126_s17 }
 0x2d9   : > { %v1097_v24 = vpop.permute.xlu0 %1096 }
 0x2da   : > { %v1107_v25 = vsel %vm1087_vm15, %v4187_v49, %v1097_v24 }
 0x2e9   : > { %v1095_v22 = vpop.permute.xlu1 %1094 }
 0x2ea   : > { %v1106_v23 = vsel %vm1086_vm14, %v4180_v38, %v1095_v22 }
 0x2eb   : > { %1113 = vrot.lane.b32.xlu2 %v1106_v23, %s3955_s29  ;;  %1111 = vrot.lane.b32.xlu0 %v1106_v23, %s3956_s27 }
 0x2f3   : > { %1266 = vrot.lane.b32.xlu0 %v1107_v25, %s3956_s27  ;;  %1268 = vrot.lane.b32.xlu2 %v1107_v25, %s3955_s29 }
 0x2f9   : > { %v1099_v26 = vpop.permute.xlu1 %1098 }
 0x2fa   : > { %v1108_v27 = vsel %vm1088_vm2, %v971_v60, %v1099_v26 }
 0x2fb   : > { %1421 = vrot.lane.b32.xlu2 %v1108_v27, %s3956_s27  ;;  %1423 = vrot.lane.b32.xlu1 %v1108_v27, %s3955_s29 }
 0x301   : > { %v1101_v28 = vpop.permute.xlu1 %1100 }
 0x302   : > { %v1109_v29 = vsel %vm1089_vm3, %v975_v4, %v1101_v28 }
 0x303   : > { %1834 = vrot.lane.b32.xlu2 %v1106_v23, %s3957_s28  ;;  %1576 = vrot.lane.b32.xlu1 %v1109_v29, %s3956_s27  ;;  %s3730_s27 = sshll.u32 %s4061_s22, 3 }
 0x304   : > { %1578 = vrot.lane.b32.xlu0 %v1109_v29, %s3955_s29  ;;  %s3594_s15 = scalar_lea.hbm %s4592_s14, %s3730_s27  ;;  %s4593_s29 = sld [smem:[#allocation19_spill]] }
 0x305   : > { %s515_s27 = scalar_lea.vmem [#allocation5], %s3725_s30  ;;  %s3598_s25 = sshll.u32 %s3594_s15, 4  ;;  %s3599_s25 = int_to_ptr.hbm [resolvable:$true] %s3598_s25 }
 0x306   : > { %s3612_s15 = sshll.u32 %s4493_s24, 4  ;;  %s3868_s18 = sshra.s32 %s3599_s25, 4  ;;  %s3869_s18 = int_to_ptr.hbm [resolvable:$true] %s3868_s18  ;;  %s3613_s15 = int_to_ptr.hbm [resolvable:$true] %s3612_s15 }
 0x307   : > { %p3875_p0 = scmp.lt.s32.totalorder %s3869_s18, %s4592_s14 }
 0x30b   : > { %2290 = vrot.lane.b32.xlu2 %v1109_v29, %s3957_s28  ;;  %2138 = vrot.lane.b32.xlu1 %v1108_v27, %s3957_s28 }
 0x30c   : > { %1986 = vrot.lane.b32.xlu0 %v1107_v25, %s3957_s28 }
 0x345   : > { %v1114_v30 = vpop.permute.xlu2 %1113 }
 0x346   : > { %v1117_v31 = vsel %vm725_vm1, %v1114_v30, 0 }
 0x347   : > { %v1134_v32 = vand.u32 4294901760, %v1117_v31 }
 0x349   : > { %v1161_v33 = vsub.f32 %v1117_v31, %v1134_v32  ;;  %1135 = vmatpush.xpose.msra.mxu0 %v1134_v32 }
 0x34b   : > { %v1162_v34 = vand.u32 4294901760, %v1161_v33 }
 0x34d   : > { %1188 = vmatpush.xpose.msrb.mxu0 %v1161_v33  ;;  %v1163_v35 = vsub.f32 %v1161_v33, %v1162_v34  ;;  %v1269_v36 = vpop.permute.xlu2 %1268 }
 0x34e   : > { %v1272_v37 = vsel %vm725_vm1, %v1269_v36, 0 }
 0x34f   : > { %v1164_v38 = vand.u32 4294901760, %v1163_v35  ;;  %v1289_v39 = vand.u32 4294901760, %v1272_v37 }
 0x351   : > { %v1316_v40 = vsub.f32 %v1272_v37, %v1289_v39  ;;  %1165 = vmatpush.xpose.msra.mxu1 %v1164_v38  ;;  %1366 = vmatpush.xpose.msra.mxu3 %v1289_v39 }
 0x353   : > { %1343 = vmatpush.xpose.msra.mxu2 %v1316_v40  ;;  %v1317_v45 = vand.u32 4294901760, %v1316_v40 }
 0x355   : > { %1211 = vmatpush.xpose.msrb.mxu1 %v1134_v32  ;;  %v1422_v42 = vpop.permute.xlu2 %1421  ;;  %v1318_v49 = vsub.f32 %v1316_v40, %v1317_v45 }
 0x356   : > { %v1425_v46 = vsel %vm725_vm1, %v1422_v42, 0 }
 0x357   : > { %v4223_v50 = vand.u32 4294901760, %v1425_v46  ;;  %v1319_v56 = vand.u32 4294901760, %v1318_v49 }
 0x359   : > { %v4229_v57 = vsub.f32 %v1425_v46, %v4223_v50 }
 0x35b   : > { %v1448_v60 = vand.u32 4294901760, %v4229_v57 }
 0x35d   : > { %v1112_v41 = vpop.permute.xlu0 %1111  ;;  %v1449_v0 = vsub.f32 %v4229_v57, %v1448_v60  ;;  %v1835_v1 = vpop.permute.xlu2 %1834 }
 0x35e   : > { %v1115_v43 = vsel %vm725_vm1, %v1112_v41, 0  ;;  %v1855_v5 = vand.u32 4294901760, %v1835_v1 }
 0x35f   : > { %v1136_v44 = vand.u32 4294901760, %v1115_v43  ;;  %v1450_v4 = vand.u32 4294901760, %v1449_v0 }
 0x360   : > { %v1882_v10 = vsub.f32 %v1835_v1, %v1855_v5 }
 0x361   : > { %v1137_v47 = vsub.f32 %v1115_v43, %v1136_v44  ;;  %1167 = vmatmul.f32.vlgmr.msra.gmra.mxu1 %v1136_v44 }
 0x362   : > { %1259 = vmatpush.xpose.msra.mxu1 %v1134_v32  ;;  %v1883_v15 = vand.u32 4294901760, %v1882_v10 }
 0x363   : > { %v1138_v48 = vand.u32 4294901760, %v1137_v47 }
 0x364   : > { %v1884_v20 = vsub.f32 %v1882_v10, %v1883_v15 }
 0x365   : > { %v1139_v51 = vsub.f32 %v1137_v47, %v1138_v48  ;;  %v1267_v52 = vpop.permute.xlu0 %1266  ;;  %v2291_v1 = vpop.permute.xlu2 %2290 }
 0x366   : > { %v1270_v53 = vsel %vm725_vm1, %v1267_v52, 0  ;;  %v1885_v23 = vand.u32 4294901760, %v1884_v20 }
 0x367   : > { %v1140_v54 = vand.u32 4294901760, %v1139_v51  ;;  %v4226_v55 = vand.u32 4294901760, %v1270_v53 }
 0x369   : > { %v1292_v58 = vsub.f32 %v1270_v53, %v4226_v55  ;;  %1141 = vmatmul.f32.vlgmr.msra.gmra.mxu0 %v1140_v54  ;;  %1215 = vmatmul.f32.vlgmr.msrb.gmra.mxu1 %v1138_v48 }
 0x36a   : > { %1237 = vmatpush.xpose.msra.mxu0 %v1162_v34  ;;  %1320 = vmatpush.xpose.msrb.mxu1 %v1319_v56 }
 0x36b   : > { %v1293_v59 = vand.u32 4294901760, %v1292_v58  ;;  %1346 = vmatmul.f32.vlgmr.msra.gmra.mxu2 %v1292_v58 }
 0x36d   : > { %v1424_v61 = vpop.permute.xlu1 %1423  ;;  %1370 = vmatmul.f32.vlgmr.msra.gmra.mxu3 %v1293_v59  ;;  %v1294_v14 = vsub.f32 %v1292_v58, %v1293_v59 }
 0x36e   : > { %v1427_v62 = vsel %vm725_vm1, %v1424_v61, 0 }
 0x36f   : > { %v1444_v63 = vand.u32 4294901760, %v1427_v62  ;;  %v1295_v19 = vand.u32 4294901760, %v1294_v14 }
 0x371   : > { %v1471_v2 = vsub.f32 %v1427_v62, %v1444_v63  ;;  %1191 = vmatmul.f32.vlgmr.msrb.gmra.mxu0 %v1137_v47  ;;  %1261 = vmatmul.f32.vlgmr.msra.gmra.mxu1 %v1136_v44 }
 0x372   : > { %1290 = vmatpush.xpose.msrb.mxu0 %v1289_v39  ;;  %1414 = vmatpush.xpose.msra.mxu1 %v1289_v39 }
 0x373   : > { %v1472_v3 = vand.u32 4294901760, %v1471_v2  ;;  %1445 = vmatpush.xpose.msrb.mxu2 %v1444_v63 }
 0x375   : > { %v1473_v6 = vsub.f32 %v1471_v2, %v1472_v3  ;;  %v1577_v13 = vpop.permute.xlu1 %1576 }
 0x376   : > { %1451 = vmatmul.f32.vlgmr.msrb.gmra.mxu2 %v1450_v4  ;;  %v1579_v7 = vpop.permute.xlu0 %1578  ;;  %v1580_v17 = vsel %vm725_vm1, %v1577_v13, 0 }
 0x377   : > { %1547 = vmatpush.xpose.msra.mxu2 %v1472_v3  ;;  %v1474_v8 = vand.u32 4294901760, %v1473_v6  ;;  %v1582_v9 = vsel %vm725_vm1, %v1579_v7, 0  ;;  %v1601_v22 = vand.u32 4294901760, %v1580_v17  ;;  %v2311_v7 = vand.u32 4294901760, %v2291_v1 }
 0x378   : > { %v1599_v11 = vand.u32 4294901760, %v1582_v9 }
 0x379   : > { %1239 = vmatmul.f32.vlgmr.msra.gmra.mxu0 %v1136_v44  ;;  %1322 = vmatmul.f32.vlgmr.msrb.gmra.mxu1 %v4226_v55  ;;  %v1602_v24 = vsub.f32 %v1580_v17, %v1601_v22 }
 0x37a   : > { %v1626_v12 = vsub.f32 %v1582_v9, %v1599_v11  ;;  %1392 = vmatpush.xpose.msra.mxu0 %v1317_v45  ;;  %1475 = vmatpush.xpose.msrb.mxu3 %v1474_v8 }
 0x37b   : > { %1521 = vmatpush.xpose.msrb.mxu1 %v1444_v63  ;;  %v1603_v27 = vand.u32 4294901760, %v1602_v24 }
 0x37c   : > { %v1627_v16 = vand.u32 4294901760, %v1626_v12  ;;  %1653 = vmatpush.xpose.msrb.mxu2 %v1626_v12 }
 0x37d   : > { %1477 = vmatmul.f32.vlgmr.msrb.gmra.mxu3 %v4223_v50  ;;  %v1604_v30 = vsub.f32 %v1602_v24, %v1603_v27  ;;  %v2139_v41 = vpop.permute.xlu1 %2138 }
 0x37e   : > { %1569 = vmatpush.xpose.msra.mxu3 %v1444_v63  ;;  %v1628_v18 = vsub.f32 %v1626_v12, %v1627_v16  ;;  %1549 = vmatmul.f32.vlgmr.msra.gmra.mxu2 %v4223_v50  ;;  %v1987_v25 = vpop.permute.xlu0 %1986  ;;  %v4248_v44 = vand.u32 4294901760, %v2139_v41 }
 0x37f   : > { %v2007_v26 = vand.u32 4294901760, %v1987_v25  ;;  %v1605_v32 = vand.u32 4294901760, %v1604_v30 }
 0x380   : > { %1856 = vmatpush.msra.mxu2 %v1855_v5  ;;  %v1629_v21 = vand.u32 4294901760, %v1628_v18  ;;  %v4251_v49 = vsub.f32 %v2139_v41, %v4248_v44 }
 0x381   : > { %1296 = vmatmul.f32.vlgmr.msrb.gmra.mxu0 %v1295_v19  ;;  %1416 = vmatmul.f32.vlgmr.msra.gmra.mxu1 %v4226_v55  ;;  %v4243_v28 = vsub.f32 %v1987_v25, %v2007_v26 }
 0x382   : > { %1676 = vmatpush.xpose.msrb.mxu3 %v1599_v11  ;;  %1498 = vmatpush.xpose.msrb.mxu0 %v1471_v2 }
 0x383   : > { %1630 = vmatpush.xpose.msra.mxu1 %v1629_v21  ;;  %v2035_v29 = vand.u32 4294901760, %v4243_v28 }
 0x385   : > { %1571 = vmatmul.f32.vlgmr.msra.gmra.mxu3 %v4223_v50  ;;  %v2036_v31 = vsub.f32 %v4243_v28, %v2035_v29 }
 0x386   : > { %1656 = vmatmul.f32.vlgmr.msrb.gmra.mxu2 %v1602_v24  ;;  %1886 = vmatpush.msra.mxu3 %v1885_v23 }
 0x387   : > { %1958 = vmatpush.msrb.mxu2 %v1883_v15  ;;  %v2037_v33 = vand.u32 4294901760, %v2036_v31 }
 0x389   : > { %1394 = vmatmul.f32.vlgmr.msra.gmra.mxu0 %v4226_v55  ;;  %1525 = vmatmul.f32.vlgmr.msrb.gmra.mxu1 %v1448_v60  ;;  %v2187_v55 = vand.u32 4294901760, %v4251_v49 }
 0x38a   : > { %1600 = vmatpush.xpose.msra.mxu0 %v1599_v11  ;;  %1724 = vmatpush.xpose.msrb.mxu1 %v1599_v11  ;;  %v4266_v11 = vsub.f32 %v2291_v1, %v2311_v7 }
 0x38b   : > { %v2188_v62 = vsub.f32 %v4251_v49, %v2187_v55 }
 0x38c   : > { %v2339_v19 = vand.u32 4294901760, %v4266_v11 }
 0x38d   : > { %1680 = vmatmul.f32.vlgmr.msrb.gmra.mxu3 %v1603_v27 }
 0x38e   : > { %1980 = vmatpush.msrb.mxu3 %v1855_v5  ;;  %v2340_v25 = vsub.f32 %v4266_v11, %v2339_v19 }
 0x391   : > { %1501 = vmatmul.f32.vlgmr.msrb.gmra.mxu0 %v4229_v57  ;;  %1632 = vmatmul.f32.vlgmr.msra.gmra.mxu1 %v1601_v22 }
 0x392   : > { %1702 = vmatpush.xpose.msrb.mxu0 %v1627_v16  ;;  %1932 = vmatpush.msra.mxu1 %v1855_v5  ;;  %v2189_v5 = vand.u32 4294901760, %v2188_v62  ;;  %v2443_v62 = vld [vmem:[%s4552_s4 + $0x8] sm:$0xff] }
 0x399   : > { %1606 = vmatmul.f32.vlgmr.msra.gmra.mxu0 %v1605_v32  ;;  %1726 = vmatmul.f32.vlgmr.msrb.gmra.mxu1 %v1601_v22 }
 0x39a   : > { %1909 = vmatpush.msra.mxu0 %v1882_v10  ;;  %2038 = vmatpush.msrb.mxu1 %v2037_v33  ;;  %v2341_v33 = vand.u32 4294901760, %v2340_v25  ;;  %v2445_v25 = vld [vmem:[%s4552_s4 + $0x18] sm:$0xff] }
 0x3a1   : > { %1704 = vmatmul.f32.vlgmr.msrb.gmra.mxu0 %v1601_v22 }
 0x3a2   : > { %2008 = vmatpush.msrb.mxu0 %v2007_v26 }
 0x3de   : > { %v1168_v34 = vpop.f32.mrf.mxu1 }
 0x3e6   : > { %v1142_v35 = vpop.f32.mrf.mxu0  ;;  %v1216_v36 = vpop.f32.mrf.mxu1 }
 0x3e7   : > { %v1169_v39 = vadd.f32 %v1168_v34, %v1142_v35 }
 0x3ee   : > { %v1192_v37 = vpop.f32.mrf.mxu0  ;;  %v1262_v38 = vpop.f32.mrf.mxu1 }
 0x3ef   : > { %v1193_v40 = vadd.f32 %v1192_v37, %v1169_v39  ;;  %v1347_v48 = vpop.f32.mrf.mxu2 }
 0x3f0   : > { %v1371_v57 = vpop.f32.mrf.mxu3 }
 0x3f1   : > { %v1217_v42 = vadd.f32 %v1216_v36, %v1193_v40 }
 0x3f6   : > { %v1240_v43 = vpop.f32.mrf.mxu0  ;;  %v1323_v46 = vpop.f32.mrf.mxu1 }
 0x3f7   : > { %v1241_v45 = vadd.f32 %v1240_v43, %v1217_v42 }
 0x3f9   : > { %v1263_v47 = vadd.f32 %v1262_v38, %v1241_v45  ;;  %v1452_v63 = vpop.f32.mrf.mxu2 }
 0x3fb   : > { %v4253_v50 = vmul.f32 0.35355338, %v1263_v47 }
 0x3fd   : > { %v1838_v51 = vsel %vm725_vm1, %v4253_v50, 0  ;;  %v1734_v52 = vsel %vm725_vm1, %v4253_v50, -inf }
 0x3fe   : > { %1735 = vmax.xlane.f32.xlu2 %v1734_v52  ;;  %v1297_v53 = vpop.f32.mrf.mxu0  ;;  %v1857_v54 = vand.u32 4294901760, %v1838_v51  ;;  %v1417_v60 = vpop.f32.mrf.mxu1 }
 0x3ff   : > { %v1324_v56 = vadd.f32 %v1323_v46, %v1297_v53 }
 0x400   : > { %1888 = vmatmul.f32.vlgmr.msra.gmra.mxu3 %v1857_v54  ;;  %v1858_v58 = vsub.f32 %v1838_v51, %v1857_v54  ;;  %v1478_v8 = vpop.f32.mrf.mxu3 }
 0x401   : > { %v1348_v59 = vadd.f32 %v1347_v48, %v1324_v56  ;;  %2084 = vmatpush.msra.mxu3 %v2007_v26  ;;  %v1479_v13 = vadd.f32 %v1478_v8, %v1452_v63  ;;  %v1550_v15 = vpop.f32.mrf.mxu2  ;;  %v2442_v56 = vld [vmem:[%s4552_s4] sm:$0xff]  ;;  %v2613_v63 = vand.u32 4294901760, %v2443_v62 }
 0x402   : > { %1912 = vmatmul.f32.vlgmr.msra.gmra.mxu0 %v1858_v58  ;;  %v1859_v61 = vand.u32 4294901760, %v1858_v58 }
 0x403   : > { %2110 = vmatpush.msra.mxu0 %v2035_v29  ;;  %v1372_v2 = vadd.f32 %v1371_v57, %v1348_v59  ;;  %v2464_v57 = vand.u32 4294901760, %v2442_v56 }
 0x404   : > { %1936 = vmatmul.f32.vlgmr.msra.gmra.mxu1 %v1859_v61  ;;  %v1860_v0 = vsub.f32 %v1858_v58, %v1859_v61 }
 0x405   : > { %2132 = vmatpush.msra.mxu1 %v2007_v26  ;;  %v2491_v58 = vsub.f32 %v2442_v56, %v2464_v57 }
 0x406   : > { %v1395_v3 = vpop.f32.mrf.mxu0  ;;  %v1861_v4 = vand.u32 4294901760, %v1860_v0  ;;  %v1526_v12 = vpop.f32.mrf.mxu1  ;;  %v2640_v0 = vsub.f32 %v2443_v62, %v2613_v63 }
 0x407   : > { %v1396_v6 = vadd.f32 %v1395_v3, %v1372_v2  ;;  %v2492_v59 = vand.u32 4294901760, %v2491_v58 }
 0x408   : > { %1862 = vmatmul.f32.vlgmr.msra.gmra.mxu2 %v1861_v4  ;;  %1982 = vmatmul.f32.vlgmr.msrb.gmra.mxu3 %v1857_v54  ;;  %v1572_v22 = vpop.f32.mrf.mxu3  ;;  %v2641_v1 = vand.u32 4294901760, %v2640_v0 }
 0x409   : > { %v1418_v9 = vadd.f32 %v1417_v60, %v1396_v6  ;;  %2061 = vmatpush.msra.mxu2 %v4243_v28  ;;  %2190 = vmatpush.msrb.mxu3 %v2189_v5  ;;  %v1657_v34 = vpop.f32.mrf.mxu2  ;;  %v2493_v60 = vsub.f32 %v2491_v58, %v2492_v59 }
 0x40a   : > { %v2642_v2 = vsub.f32 %v2640_v0, %v2641_v1 }
 0x40b   : > { %v4264_v10 = vmul.f32 0.35355338, %v1418_v9  ;;  %v2494_v61 = vand.u32 4294901760, %v2493_v60 }
 0x40c   : > { %v2643_v3 = vand.u32 4294901760, %v2642_v2 }
 0x40d   : > { %v1990_v14 = vsel %vm725_vm1, %v4264_v10, 0 }
 0x40e   : > { %v1502_v16 = vpop.f32.mrf.mxu0  ;;  %v2009_v17 = vand.u32 4294901760, %v1990_v14  ;;  %v1633_v28 = vpop.f32.mrf.mxu1 }
 0x40f   : > { %v1503_v18 = vadd.f32 %v1502_v16, %v1479_v13 }
 0x410   : > { %1960 = vmatmul.f32.vlgmr.msrb.gmra.mxu2 %v1857_v54  ;;  %2040 = vmatmul.f32.vlgmr.msrb.gmra.mxu1 %v2009_v17  ;;  %v2010_v20 = vsub.f32 %v1990_v14, %v2009_v17  ;;  %v1681_v38 = vpop.f32.mrf.mxu3 }
 0x411   : > { %v1527_v21 = vadd.f32 %v1526_v12, %v1503_v18  ;;  %2160 = vmatpush.msrb.mxu2 %v4248_v44  ;;  %2236 = vmatpush.msrb.mxu1 %v4248_v44 }
 0x412   : > { %v2011_v23 = vand.u32 4294901760, %v2010_v20 }
 0x413   : > { %v1551_v24 = vadd.f32 %v1550_v15, %v1527_v21 }
 0x414   : > { %2088 = vmatmul.f32.vlgmr.msra.gmra.mxu3 %v2011_v23  ;;  %v2012_v26 = vsub.f32 %v2010_v20, %v2011_v23 }
 0x415   : > { %v1573_v27 = vadd.f32 %v1572_v22, %v1551_v24  ;;  %2284 = vmatpush.msra.mxu3 %v4248_v44 }
 0x416   : > { %v1607_v29 = vpop.f32.mrf.mxu0  ;;  %v2013_v30 = vand.u32 4294901760, %v2012_v26  ;;  %v1727_v44 = vpop.f32.mrf.mxu1 }
 0x417   : > { %v4275_v31 = vmul.f32 0.35355338, %v1573_v27  ;;  %v1634_v32 = vadd.f32 %v1633_v28, %v1607_v29 }
 0x418   : > { %2014 = vmatmul.f32.vlgmr.msrb.gmra.mxu0 %v2013_v30  ;;  %2064 = vmatmul.f32.vlgmr.msra.gmra.mxu2 %v2010_v20 }
 0x419   : > { %v1658_v35 = vadd.f32 %v1657_v34, %v1634_v32  ;;  %2134 = vmatmul.f32.vlgmr.msra.gmra.mxu1 %v2009_v17  ;;  %2213 = vmatpush.msrb.mxu0 %v4251_v49  ;;  %v2142_v36 = vsel %vm725_vm1, %v4275_v31, 0  ;;  %v4306_v32 = vand.u32 4294901760, %v2445_v25 }
 0x41a   : > { %2262 = vmatpush.msra.mxu2 %v2187_v55  ;;  %2342 = vmatpush.msra.mxu1 %v2341_v33  ;;  %v2161_v37 = vand.u32 4294901760, %v2142_v36 }
 0x41b   : > { %v1682_v40 = vadd.f32 %v1681_v38, %v1658_v35 }
 0x41c   : > { %v2162_v39 = vsub.f32 %v2142_v36, %v2161_v37  ;;  %2192 = vmatmul.f32.vlgmr.msrb.gmra.mxu3 %v2161_v37 }
 0x41d   : > { %2388 = vmatpush.msrb.mxu3 %v2311_v7 }
 0x41e   : > { %v1705_v41 = vpop.f32.mrf.mxu0  ;;  %v2163_v42 = vand.u32 4294901760, %v2162_v39 }
 0x41f   : > { %v1706_v43 = vadd.f32 %v1705_v41, %v1682_v40  ;;  %v4309_v40 = vsub.f32 %v2445_v25, %v4306_v32 }
 0x420   : > { %2112 = vmatmul.f32.vlgmr.msra.gmra.mxu0 %v2009_v17  ;;  %v2164_v45 = vsub.f32 %v2162_v39, %v2163_v42 }
 0x421   : > { %v1728_v46 = vadd.f32 %v1727_v44, %v1706_v43  ;;  %2240 = vmatmul.f32.vlgmr.msrb.gmra.mxu1 %v2163_v42  ;;  %2312 = vmatpush.msra.mxu0 %v2311_v7  ;;  %v2939_v44 = vand.u32 4294901760, %v4309_v40 }
 0x422   : > { %2436 = vmatpush.msrb.mxu1 %v2311_v7  ;;  %v2165_v47 = vand.u32 4294901760, %v2164_v45 }
 0x423   : > { %v4282_v48 = vmul.f32 0.35355338, %v1728_v46 }
 0x424   : > { %2166 = vmatmul.f32.vlgmr.msrb.gmra.mxu2 %v2165_v47  ;;  %2286 = vmatmul.f32.vlgmr.msra.gmra.mxu3 %v2161_v37 }
 0x425   : > { %v2294_v49 = vsel %vm725_vm1, %v4282_v48, 0  ;;  %2365 = vmatpush.msrb.mxu2 %v4266_v11  ;;  %2495 = vmatpush.msra.mxu3 %v2494_v61  ;;  %v2444_v11 = vld [vmem:[%s4552_s4 + $0x10] sm:$0xff] }
 0x426   : > { %v2313_v51 = vand.u32 4294901760, %v2294_v49  ;;  %v2762_v12 = vand.u32 4294901760, %v2444_v11 }
 0x428   : > { %2216 = vmatmul.f32.vlgmr.msrb.gmra.mxu0 %v2162_v39  ;;  %v2314_v52 = vsub.f32 %v2294_v49, %v2313_v51  ;;  %v4296_v17 = vsub.f32 %v2444_v11, %v2762_v12 }
 0x429   : > { %2344 = vmatmul.f32.vlgmr.msra.gmra.mxu1 %v2313_v51  ;;  %2414 = vmatpush.msrb.mxu0 %v2339_v19 }
 0x42a   : > { %v2315_v53 = vand.u32 4294901760, %v2314_v52  ;;  %2541 = vmatpush.msra.mxu1 %v2464_v57  ;;  %v2790_v22 = vand.u32 4294901760, %v4296_v17 }
 0x42c   : > { %2264 = vmatmul.f32.vlgmr.msra.gmra.mxu2 %v2161_v37  ;;  %2392 = vmatmul.f32.vlgmr.msrb.gmra.mxu3 %v2315_v53  ;;  %v2316_v54 = vsub.f32 %v2314_v52, %v2315_v53  ;;  %v2791_v30 = vsub.f32 %v4296_v17, %v2790_v22  ;;  %v2940_v53 = vsub.f32 %v4309_v40, %v2939_v44 }
 0x42d   : > { %2465 = vmatpush.msra.mxu2 %v2464_v57  ;;  %2589 = vmatpush.msrb.mxu3 %v2464_v57 }
 0x42e   : > { %v2317_v55 = vand.u32 4294901760, %v2316_v54  ;;  %v2792_v39 = vand.u32 4294901760, %v2791_v30 }
 0x430   : > { %2318 = vmatmul.f32.vlgmr.msra.gmra.mxu0 %v2317_v55 }
 0x431   : > { %2438 = vmatmul.f32.vlgmr.msrb.gmra.mxu1 %v2313_v51  ;;  %2518 = vmatpush.msra.mxu0 %v2491_v58  ;;  %v2941_v58 = vand.u32 4294901760, %v2940_v53 }
 0x432   : > { %2644 = vmatpush.msrb.mxu1 %v2643_v3 }
 0x434   : > { %2368 = vmatmul.f32.vlgmr.msrb.gmra.mxu2 %v2314_v52 }
 0x435   : > { %2567 = vmatpush.msrb.mxu2 %v2492_v59 }
 0x438   : > { %2416 = vmatmul.f32.vlgmr.msrb.gmra.mxu0 %v2313_v51 }
 0x439   : > { %2614 = vmatpush.msrb.mxu0 %v2613_v63 }
 0x47f   : > { %v1913_v7 = vpop.f32.mrf.mxu0 }
 0x481   : > { %v1937_v8 = vpop.f32.mrf.mxu1 }
 0x483   : > { %v1889_v4 = vpop.f32.mrf.mxu3 }
 0x48b   : > { %v1863_v5 = vpop.f32.mrf.mxu2  ;;  %v1983_v14 = vpop.f32.mrf.mxu3 }
 0x48c   : > { %v1890_v6 = vadd.f32 %v1889_v4, %v1863_v5 }
 0x48d   : > { %v2041_v18 = vpop.f32.mrf.mxu1 }
 0x48e   : > { %v1914_v9 = vadd.f32 %v1913_v7, %v1890_v6 }
 0x490   : > { %v1938_v13 = vadd.f32 %v1937_v8, %v1914_v9 }
 0x493   : > { %v1961_v15 = vpop.f32.mrf.mxu2 }
 0x494   : > { %v1962_v16 = vadd.f32 %v1961_v15, %v1938_v13 }
 0x495   : > { %v2015_v19 = vpop.f32.mrf.mxu0 }
 0x496   : > { %v1984_v20 = vadd.f32 %v1983_v14, %v1962_v16  ;;  %v2042_v24 = vadd.f32 %v2041_v18, %v2015_v19  ;;  %v2135_v36 = vpop.f32.mrf.mxu1 }
 0x497   : > { %v2089_v27 = vpop.f32.mrf.mxu3 }
 0x498   : > { %v2447_v21 = vsel %vm725_vm1, %v1984_v20, 0 }
 0x499   : > { %v2466_v23 = vand.u32 4294901760, %v2447_v21 }
 0x49b   : > { %v2467_v26 = vsub.f32 %v2447_v21, %v2466_v23  ;;  %v2065_v28 = vpop.f32.mrf.mxu2  ;;  %2497 = vmatmul.f32.vlgmr.msra.gmra.mxu3 %v2466_v23 }
 0x49c   : > { %v2066_v29 = vadd.f32 %v2065_v28, %v2042_v24  ;;  %2690 = vmatpush.msra.mxu3 %v2613_v63 }
 0x49d   : > { %v2113_v33 = vpop.f32.mrf.mxu0  ;;  %2521 = vmatmul.f32.vlgmr.msra.gmra.mxu0 %v2467_v26  ;;  %v2468_v34 = vand.u32 4294901760, %v2467_v26 }
 0x49e   : > { %v2090_v35 = vadd.f32 %v2089_v27, %v2066_v29  ;;  %2716 = vmatpush.msra.mxu0 %v2641_v1  ;;  %v2241_v54 = vpop.f32.mrf.mxu1 }
 0x49f   : > { %2545 = vmatmul.f32.vlgmr.msra.gmra.mxu1 %v2468_v34  ;;  %v2469_v37 = vsub.f32 %v2467_v26, %v2468_v34  ;;  %v2193_v46 = vpop.f32.mrf.mxu3 }
 0x4a0   : > { %v2114_v38 = vadd.f32 %v2113_v33, %v2090_v35  ;;  %2738 = vmatpush.msra.mxu1 %v2613_v63 }
 0x4a1   : > { %v2470_v41 = vand.u32 4294901760, %v2469_v37 }
 0x4a2   : > { %v2136_v42 = vadd.f32 %v2135_v36, %v2114_v38 }
 0x4a3   : > { %2471 = vmatmul.f32.vlgmr.msra.gmra.mxu2 %v2470_v41  ;;  %2591 = vmatmul.f32.vlgmr.msrb.gmra.mxu3 %v2466_v23 }
 0x4a4   : > { %v2596_v43 = vsel %vm725_vm1, %v2136_v42, 0  ;;  %2667 = vmatpush.msra.mxu2 %v2640_v0  ;;  %2793 = vmatpush.msrb.mxu3 %v2792_v39 }
 0x4a5   : > { %v2615_v45 = vand.u32 4294901760, %v2596_v43  ;;  %v2217_v49 = vpop.f32.mrf.mxu0 }
 0x4a6   : > { %v2345_v2 = vpop.f32.mrf.mxu1 }
 0x4a7   : > { %v2616_v47 = vsub.f32 %v2596_v43, %v2615_v45  ;;  %v2167_v51 = vpop.f32.mrf.mxu2  ;;  %2646 = vmatmul.f32.vlgmr.msrb.gmra.mxu1 %v2615_v45  ;;  %v2287_v61 = vpop.f32.mrf.mxu3 }
 0x4a8   : > { %v2194_v52 = vadd.f32 %v2193_v46, %v2167_v51  ;;  %2839 = vmatpush.msrb.mxu1 %v2762_v12 }
 0x4a9   : > { %v2617_v55 = vand.u32 4294901760, %v2616_v47 }
 0x4aa   : > { %v2218_v56 = vadd.f32 %v2217_v49, %v2194_v52 }
 0x4ab   : > { %2569 = vmatmul.f32.vlgmr.msrb.gmra.mxu2 %v2466_v23  ;;  %2694 = vmatmul.f32.vlgmr.msra.gmra.mxu3 %v2617_v55  ;;  %v2618_v57 = vsub.f32 %v2616_v47, %v2617_v55 }
 0x4ac   : > { %2763 = vmatpush.msrb.mxu2 %v2762_v12  ;;  %2887 = vmatpush.msra.mxu3 %v2762_v12  ;;  %v2242_v60 = vadd.f32 %v2241_v54, %v2218_v56 }
 0x4ad   : > { %v2619_v59 = vand.u32 4294901760, %v2618_v57  ;;  %v2319_v0 = vpop.f32.mrf.mxu0 }
 0x4ae   : > { %v2346_v5 = vadd.f32 %v2345_v2, %v2319_v0  ;;  %v2439_v16 = vpop.f32.mrf.mxu1 }
 0x4af   : > { %v2265_v62 = vpop.f32.mrf.mxu2  ;;  %2620 = vmatmul.f32.vlgmr.msrb.gmra.mxu0 %v2619_v59  ;;  %2740 = vmatmul.f32.vlgmr.msra.gmra.mxu1 %v2615_v45  ;;  %v2393_v9 = vpop.f32.mrf.mxu3 }
 0x4b0   : > { %v2266_v63 = vadd.f32 %v2265_v62, %v2242_v60  ;;  %2816 = vmatpush.msrb.mxu0 %v4296_v17  ;;  %2942 = vmatpush.msra.mxu1 %v2941_v58 }
 0x4b2   : > { %v2288_v1 = vadd.f32 %v2287_v61, %v2266_v63 }
 0x4b3   : > { %2670 = vmatmul.f32.vlgmr.msra.gmra.mxu2 %v2616_v47 }
 0x4b4   : > { %v2745_v3 = vsel %vm725_vm1, %v2288_v1, 0  ;;  %2865 = vmatpush.msra.mxu2 %v2790_v22 }
 0x4b5   : > { %v2764_v4 = vand.u32 4294901760, %v2745_v3  ;;  %v2417_v13 = vpop.f32.mrf.mxu0 }
 0x4b7   : > { %v2765_v6 = vsub.f32 %v2745_v3, %v2764_v4  ;;  %v2369_v7 = vpop.f32.mrf.mxu2  ;;  %2718 = vmatmul.f32.vlgmr.msra.gmra.mxu0 %v2615_v45  ;;  %2795 = vmatmul.f32.vlgmr.msrb.gmra.mxu3 %v2764_v4 }
 0x4b8   : > { %v2370_v8 = vadd.f32 %v2369_v7, %v2346_v5  ;;  %2988 = vmatpush.msrb.mxu3 %v4306_v32  ;;  %2912 = vmatpush.msra.mxu0 %v4306_v32 }
 0x4b9   : > { %v2766_v11 = vand.u32 4294901760, %v2765_v6 }
 0x4ba   : > { %v2394_v12 = vadd.f32 %v2393_v9, %v2370_v8 }
 0x4bb   : > { %2843 = vmatmul.f32.vlgmr.msrb.gmra.mxu1 %v2766_v11  ;;  %v2767_v14 = vsub.f32 %v2765_v6, %v2766_v11 }
 0x4bc   : > { %v2418_v15 = vadd.f32 %v2417_v13, %v2394_v12  ;;  %3036 = vmatpush.msrb.mxu1 %v4306_v32 }
 0x4bd   : > { %v2768_v17 = vand.u32 4294901760, %v2767_v14  ;;  %v3794_v14 = vld [vmem:[%s4553_s5] ss:$0 sm:$0xff] }
 0x4be   : > { %v2440_v18 = vadd.f32 %v2439_v16, %v2418_v15 }
 0x4bf   : > { %2769 = vmatmul.f32.vlgmr.msrb.gmra.mxu2 %v2768_v17  ;;  %2819 = vmatmul.f32.vlgmr.msrb.gmra.mxu0 %v2765_v6 }
 0x4c0   : > { %2889 = vmatmul.f32.vlgmr.msra.gmra.mxu3 %v2764_v4  ;;  %v2894_v19 = vsel %vm725_vm1, %v2440_v18, 0  ;;  %2965 = vmatpush.msrb.mxu2 %v4309_v40  ;;  %v3823_v18 = vld [vmem:[%s4132_s26] sm:$0xff]  ;;  %s3727_s26 = sshll.u32 %s4126_s17, 5 }
 0x4c1   : > { %v2913_v20 = vand.u32 4294901760, %v2894_v19  ;;  %3014 = vmatpush.msrb.mxu0 %v2939_v44  ;;  %s4377_s28 = scalar_lea.vmem [#allocation6], %s3727_s26  ;;  %s3596_s26 = sshll.u32 %s515_s27, 4  ;;  %s3597_s26 = int_to_ptr.vmem [resolvable:$true] %s3596_s26 }
 0x4c2   : > { %s3610_s23 = sshll.u32 %s4377_s28, 4  ;;  %s4501_s23 = int_to_ptr.vmem [resolvable:$true] %s3610_s23 }
 0x4c3   : > { %v2914_v21 = vsub.f32 %v2894_v19, %v2913_v20  ;;  %2944 = vmatmul.f32.vlgmr.msra.gmra.mxu1 %v2913_v20 }
 0x4c5   : > { %v2915_v22 = vand.u32 4294901760, %v2914_v21 }
 0x4c7   : > { %2867 = vmatmul.f32.vlgmr.msra.gmra.mxu2 %v2764_v4  ;;  %v2916_v23 = vsub.f32 %v2914_v21, %v2915_v22 }
 0x4c8   : > { %2992 = vmatmul.f32.vlgmr.msrb.gmra.mxu3 %v2915_v22  ;;  %v3958_v22 = vmov 32.0  }
 0x4c9   : > { %v2917_v24 = vand.u32 4294901760, %v2916_v23  ;;  %3801 = vrcp.f32 %v3958_v22 }
 0x4cb   : > { %2918 = vmatmul.f32.vlgmr.msra.gmra.mxu0 %v2917_v24  ;;  %3038 = vmatmul.f32.vlgmr.msrb.gmra.mxu1 %v2913_v20 }
 0x4cf   : > { %2968 = vmatmul.f32.vlgmr.msrb.gmra.mxu2 %v2914_v21  ;;  %v1737_v21 = vsel %vm725_vm1, %v4264_v10, -inf  ;;  %v3802_v23 = vpop.eup %3801 }
 0x4d0   : > { %v3061_v24 = vmul.f32 32.0, %v3802_v23  ;;  %vm3065_vm4 = vweird.f32 %v3802_v23 }
 0x4d3   : > { %3016 = vmatmul.f32.vlgmr.msrb.gmra.mxu0 %v2913_v20 }
 0x51a   : > { %v2522_v27 = vpop.f32.mrf.mxu0 }
 0x51c   : > { %v2546_v28 = vpop.f32.mrf.mxu1 }
 0x51e   : > { %v2498_v25 = vpop.f32.mrf.mxu3 }
 0x524   : > { %v2647_v33 = vpop.f32.mrf.mxu1 }
 0x526   : > { %v2472_v26 = vpop.f32.mrf.mxu2  ;;  %v2592_v29 = vpop.f32.mrf.mxu3 }
 0x527   : > { %v2499_v43 = vadd.f32 %v2498_v25, %v2472_v26  ;;  %v3062_v25 = vsub.f32 1.0, %v3061_v24 }
 0x529   : > { %v2523_v46 = vadd.f32 %v2522_v27, %v2499_v43  ;;  %v3063_v26 = vmul.f32 %v3802_v23, %v3062_v25 }
 0x52b   : > { %v2547_v54 = vadd.f32 %v2546_v28, %v2523_v46  ;;  %v3064_v27 = vadd.f32 %v3802_v23, %v3063_v26 }
 0x52c   : > { %v2621_v30 = vpop.f32.mrf.mxu0  ;;  %v2741_v37 = vpop.f32.mrf.mxu1 }
 0x52d   : > { %v2648_v40 = vadd.f32 %v2647_v33, %v2621_v30  ;;  %v4334_v28 = vsel %vm3065_vm4, %v3802_v23, %v3064_v27 }
 0x52e   : > { %v2570_v32 = vpop.f32.mrf.mxu2  ;;  %v2695_v34 = vpop.f32.mrf.mxu3 }
 0x52f   : > { %v2571_v58 = vadd.f32 %v2570_v32, %v2547_v54  ;;  %v1736_v32 = vpop.xlane.xlu2 %1735 }
 0x531   : > { %v2593_v63 = vadd.f32 %v2592_v29, %v2571_v58 }
 0x533   : > { %v3042_v6 = vsel %vm532_vm0, %v2593_v63, 0.0 }
 0x534   : > { %v2719_v35 = vpop.f32.mrf.mxu0 }
 0x536   : > { %v2671_v36 = vpop.f32.mrf.mxu2 }
 0x537   : > { %v2672_v44 = vadd.f32 %v2671_v36, %v2648_v40 }
 0x538   : > { %v2844_v41 = vpop.f32.mrf.mxu1 }
 0x539   : > { %v2696_v47 = vadd.f32 %v2695_v34, %v2672_v44 }
 0x53a   : > { %v2796_v38 = vpop.f32.mrf.mxu3 }
 0x53b   : > { %v2720_v55 = vadd.f32 %v2719_v35, %v2696_v47  ;;  %v1746_v35 = vsub.f32 %v4253_v50, %v1736_v32 }
 0x53c   : > { %v2820_v42 = vpop.f32.mrf.mxu0 }
 0x53d   : > { %v2742_v60 = vadd.f32 %v2741_v37, %v2720_v55  ;;  %v1750_v37 = vmul.f32 1.442695, %v1746_v35 }
 0x53f   : > { %v3043_v3 = vsel %vm532_vm0, %v2742_v60, 0.0  ;;  %3803 = vpow2.f32 %v1750_v37 }
 0x540   : > { %v2945_v57 = vpop.f32.mrf.mxu1  ;;  %v3044_v11 = vadd.f32 %v3043_v3, %v3042_v6 }
 0x542   : > { %v2770_v39 = vpop.f32.mrf.mxu2 }
 0x543   : > { %v2797_v45 = vadd.f32 %v2796_v38, %v2770_v39  ;;  %v2890_v51 = vpop.f32.mrf.mxu3  ;;  %v1740_v38 = vsel %vm725_vm1, %v4275_v31, -inf }
 0x545   : > { %v2821_v49 = vadd.f32 %v2820_v42, %v2797_v45  ;;  %v4345_v39 = vpop.eup %3803  ;;  %v3096_v42 = vld [vmem:[%s4556_s8 + $0x10] sm:$0xff]  ;;  %v3095_v45 = vld [vmem:[%s4556_s8 + $0x8] sm:$0xff] }
 0x546   : > { %v1758_v40 = vsel %vm725_vm1, %v4345_v39, 0.0  ;;  %v3119_v44 = vand.u32 4294901760, %v3096_v42 }
 0x547   : > { %v2845_v56 = vadd.f32 %v2844_v41, %v2821_v49  ;;  %v3097_v41 = vld [vmem:[%s4556_s8 + $0x18] sm:$0xff]  ;;  %v3121_v49 = vand.u32 4294901760, %v3095_v45 }
 0x548   : > { %v2919_v53 = vpop.f32.mrf.mxu0  ;;  %v3039_v9 = vpop.f32.mrf.mxu1  ;;  %v3117_v50 = vand.u32 4294901760, %v3097_v41  ;;  %v3153_v47 = vsub.f32 %v3096_v42, %v3119_v44 }
 0x549   : > { %v2946_v61 = vadd.f32 %v2945_v57, %v2919_v53  ;;  %v3159_v54 = vsub.f32 %v3095_v45, %v3121_v49 }
 0x54a   : > { %v2868_v52 = vpop.f32.mrf.mxu2  ;;  %v3147_v43 = vsub.f32 %v3097_v41, %v3117_v50  ;;  %3218 = vmatpush.msra.mxu1 %v3117_v50  ;;  %3118 = vmatpush.msra.mxu2 %v3117_v50  ;;  %v3154_v53 = vand.u32 4294901760, %v3153_v47 }
 0x54b   : > { %v2869_v59 = vadd.f32 %v2868_v52, %v2845_v56  ;;  %v2993_v2 = vpop.f32.mrf.mxu3  ;;  %v3160_v58 = vand.u32 4294901760, %v3159_v54 }
 0x54c   : > { %v3148_v46 = vand.u32 4294901760, %v3147_v43  ;;  %3189 = vmatpush.msra.mxu0 %v3147_v43  ;;  %3220 = vmatpush.msra.mxu1 %v3119_v44  ;;  %v3155_v57 = vsub.f32 %v3153_v47, %v3154_v53 }
 0x54d   : > { %v2891_v0 = vadd.f32 %v2890_v51, %v2869_v59  ;;  %v3094_v51 = vld [vmem:[%s4556_s8] sm:$0xff]  ;;  %3120 = vmatpush.msra.mxu2 %v3119_v44 }
 0x54e   : > { %v3149_v52 = vsub.f32 %v3147_v43, %v3148_v46  ;;  %3192 = vmatpush.msra.mxu0 %v3153_v47  ;;  %v3123_v55 = vand.u32 4294901760, %v3094_v51  ;;  %3222 = vmatpush.msra.mxu1 %v3121_v49  ;;  %v3156_v60 = vand.u32 4294901760, %v3155_v57  ;;  %v3296_v43 = vld [vmem:[%s4558_s10 + $0x28] sm:$0xff]  ;;  %v3295_v47 = vld [vmem:[%s4558_s10 + $0x20] sm:$0xff] }
 0x54f   : > { %v3045_v7 = vsel %vm532_vm0, %v2891_v0, 0.0  ;;  %3122 = vmatpush.msra.mxu2 %v3121_v49 }
 0x550   : > { %v3017_v5 = vpop.f32.mrf.mxu0  ;;  %v3046_v13 = vadd.f32 %v3045_v7, %v3044_v11  ;;  %v3150_v56 = vand.u32 4294901760, %v3149_v52  ;;  %v3165_v59 = vsub.f32 %v3094_v51, %v3123_v55  ;;  %3195 = vmatpush.msra.mxu0 %v3159_v54  ;;  %3224 = vmatpush.msra.mxu1 %v3123_v55 }
 0x551   : > { %3124 = vmatpush.msra.mxu2 %v3123_v55 }
 0x552   : > { %v2969_v62 = vpop.f32.mrf.mxu2  ;;  %3151 = vmatpush.msra.mxu3 %v3150_v56  ;;  %3198 = vmatpush.msra.mxu0 %v3165_v59 }
 0x553   : > { %v2970_v1 = vadd.f32 %v2969_v62, %v2946_v61  ;;  %v3161_v61 = vsub.f32 %v3159_v54, %v3160_v58  ;;  %v3166_v62 = vand.u32 4294901760, %v3165_v59  ;;  %3247 = vmatpush.msrb.mxu2 %v3148_v46  ;;  %v4403_v46 = vand.u32 4294901760, %v3296_v43  ;;  %v3294_v54 = vld [vmem:[%s4558_s10 + $0x18] sm:$0xff] }
 0x554   : > { %3157 = vmatpush.msra.mxu3 %v3156_v60  ;;  %v3293_v60 = vld [vmem:[%s4558_s10 + $0x10] sm:$0xff] }
 0x555   : > { %v2994_v4 = vadd.f32 %v2993_v2, %v2970_v1  ;;  %v3162_v63 = vand.u32 4294901760, %v3161_v61  ;;  %v3167_v0 = vsub.f32 %v3165_v59, %v3166_v62  ;;  %3251 = vmatpush.msrb.mxu2 %v3154_v53  ;;  %v4414_v52 = vsub.f32 %v3296_v43, %v4403_v46 }
 0x556   : > { %v4416_v53 = vand.u32 4294901760, %v3295_v47  ;;  %v3323_v59 = vand.u32 4294901760, %v3294_v54 }
 0x557   : > { %v3018_v8 = vadd.f32 %v3017_v5, %v2994_v4  ;;  %3163 = vmatpush.msra.mxu3 %v3162_v63  ;;  %v3168_v2 = vand.u32 4294901760, %v3167_v0  ;;  %3255 = vmatpush.msrb.mxu2 %v3160_v58  ;;  %v3362_v57 = vand.u32 4294901760, %v4414_v52  ;;  %v3325_v0 = vand.u32 4294901760, %v3293_v60 }
 0x558   : > { %v3367_v58 = vsub.f32 %v3295_v47, %v4416_v53 }
 0x559   : > { %v3040_v12 = vadd.f32 %v3039_v9, %v3018_v8  ;;  %3169 = vmatpush.msra.mxu3 %v3168_v2  ;;  %3259 = vmatpush.msrb.mxu2 %v3166_v62  ;;  %v3363_v62 = vsub.f32 %v4414_v52, %v3362_v57  ;;  %v3292_v2 = vld [vmem:[%s4558_s10 + $0x8] sm:$0xff] }
 0x55a   : > { %v3368_v63 = vand.u32 4294901760, %v3367_v58 }
 0x55b   : > { %v3047_v15 = vsel %vm532_vm0, %v3040_v12, 0.0  ;;  %3278 = vmatpush.msrb.mxu3 %v3117_v50 }
 0x55c   : > { %v3048_v16 = vadd.f32 %v3047_v15, %v3046_v13 }
 0x55d   : > { %3280 = vmatpush.msrb.mxu3 %v3119_v44 }
 0x55e   : > { %v3053_v17 = vadd.f32 %v3794_v14, %v3048_v16  ;;  %v3795_v14 = vld [vmem:[%s4554_s6] ss:$0 sm:$0xff] }
 0x55f   : > { %3282 = vmatpush.msrb.mxu3 %v3121_v49 }
 0x560   : > { %v3054_v19 = vadd.f32 %v3823_v18, %v3053_v17  ;;  %v3796_v17 = vld [vmem:[%s4555_s7] ss:$0 sm:$0xff] }
 0x561   : > { %3284 = vmatpush.msrb.mxu3 %v3123_v55 }
 0x562   : > { %v3057_v20 = vsel %vm532_vm0, %v3054_v19, 0.0 }
 0x563   : > { %3058 = vadd.xlane.f32.xlu0 %v3057_v20 }
 0x56b   : > { %1738 = vmax.xlane.f32.xlu0 %v1737_v21 }
 0x5d6   : > { %v3059_v29 = vpop.xlane.xlu0 %3058 }
 0x5d7   : > { %v3067_v30 = vmul.f32 %v4334_v28, %v3059_v29 }
 0x5d9   : > { %v4337_v33 = vsub.f32 %v3054_v19, %v3067_v30 }
 0x5db   : > { %v3069_v34 = vmul.f32 %v4337_v33, %v4337_v33 }
 0x5dd   : > { %v3070_v36 = vsel %vm532_vm0, %v3069_v34, 0.0 }
 0x5de   : > { %3071 = vadd.xlane.f32.xlu1 %v3070_v36 }
 0x5e6   : > { %1741 = vmax.xlane.f32.xlu1 %v1740_v38 }
 0x5ee   : > { %1759 = vadd.xlane.f32.xlu1 %v1758_v40  ;;  %v3298_v40 = vld [vmem:[%s4558_s10 + $0x38] sm:$0xff] }
 0x5ef   : > { %v4384_v41 = vand.u32 4294901760, %v3298_v40 }
 0x5f1   : > { %v4390_v50 = vsub.f32 %v3298_v40, %v4384_v41  ;;  %3316 = vmatpush.msrb.mxu0 %v4384_v41 }
 0x5f3   : > { %v3350_v44 = vand.u32 4294901760, %v4390_v50 }
 0x5f5   : > { %v3351_v49 = vsub.f32 %v4390_v50, %v3350_v44 }
 0x5f7   : > { %v3352_v55 = vand.u32 4294901760, %v3351_v49  ;;  %v3798_v49 = vld [vmem:[%s4559_s11] ss:$0 sm:$0xff] }
 0x5f9   : > { %3353 = vmatpush.msrb.mxu1 %v3352_v55 }
 0x651   : > { %v3072_v1 = vpop.xlane.xlu1 %3071 }
 0x652   : > { %v3073_v3 = vmul.f32 %v3072_v1, %v4334_v28  ;;  %v3373_v1 = vsub.f32 %v3294_v54, %v3323_v59 }
 0x654   : > { %v3074_v4 = vadd.f32 1e-05, %v3073_v3  ;;  %v3364_v3 = vand.u32 4294901760, %v3363_v62  ;;  %v1739_v62 = vpop.xlane.xlu0 %1738 }
 0x656   : > { %3805 = vrsqrt.f32 %v3074_v4  ;;  %vm3081_vm6 = vweird.f32 %v3074_v4 }
 0x659   : > { %v4362_v5 = vpop.xlane.xlu1 %1741 }
 0x65c   : > { %v3806_v6 = vpop.eup %3805 }
 0x65d   : > { %v3076_v7 = vmul.f32 %v3806_v6, %v3074_v4  ;;  %vm3082_vm5 = vweird.f32 %v3806_v6  ;;  %v3369_v4 = vsub.f32 %v3367_v58, %v3368_v63 }
 0x65e   : > { %vm3083_vm7 = vmor %vm3081_vm6, %vm3082_vm5 }
 0x65f   : > { %v3077_v8 = vmul.f32 %v3806_v6, %v3076_v7  ;;  %v3327_v7 = vand.u32 4294901760, %v3292_v2 }
 0x661   : > { %v3078_v9 = vmul.f32 0.5, %v3077_v8  ;;  %v1760_v11 = vpop.xlane.xlu1 %1759  ;;  %v3374_v8 = vand.u32 4294901760, %v3373_v1 }
 0x662   : > { %3807 = vrcp.f32 %v1760_v11  ;;  %v1781_v23 = vand.u32 2147483648, %v1760_v11  ;;  %v1779_v25 = vand.u32 2147483647, %v1760_v11  ;;  %vm1775_vm9 = vweird.f32 %v1760_v11 }
 0x663   : > { %v3079_v12 = vsub.f32 1.5, %v3078_v9  ;;  %v3291_v9 = vld [vmem:[%s4558_s10] sm:$0xff] }
 0x664   : > { %v1782_v30 = vor.u32 1.1754944e-38, %v1781_v23  ;;  %vm1780_vm11 = vcmp.eq.f32.partialorder %v1779_v25, 8.507059e+37 }
 0x665   : > { %v3080_v13 = vmul.f32 %v3806_v6, %v3079_v12 }
 0x667   : > { %v3084_v15 = vsel %vm3083_vm7, %v3806_v6, %v3080_v13  ;;  %v3379_v6 = vsub.f32 %v3293_v60, %v3325_v0  ;;  %v3385_v13 = vsub.f32 %v3292_v2, %v3327_v7 }
 0x668   : > { %v3808_v16 = vpop.eup %3807  ;;  %v3085_v18 = vmul.f32 %v3084_v15, %v4337_v33  ;;  %v3375_v15 = vsub.f32 %v3373_v1, %v3374_v8 }
 0x669   : > { %v1771_v19 = vmul.f32 %v3808_v16, %v1760_v11  ;;  %vm1776_vm8 = vweird.f32 %v3808_v16  ;;  %v3370_v11 = vand.u32 4294901760, %v3369_v4  ;;  %v3380_v12 = vand.u32 4294901760, %v3379_v6 }
 0x66a   : > { %v3089_v20 = vmul.f32 %v3795_v14, %v3085_v18  ;;  %vm1777_vm10 = vmor %vm1775_vm9, %vm1776_vm8  ;;  %v3329_v14 = vand.u32 4294901760, %v3291_v9  ;;  %v1743_v4 = vsel %vm725_vm1, %v4282_v48, -inf }
 0x66b   : > { %v1772_v21 = vsub.f32 1.0, %v1771_v19  ;;  %v3376_v19 = vand.u32 4294901760, %v3375_v15 }
 0x66c   : > { %v4371_v22 = vadd.f32 %v3796_v17, %v3089_v20  ;;  %v3386_v17 = vand.u32 4294901760, %v3385_v13  ;;  %v3391_v18 = vsub.f32 %v3291_v9, %v3329_v14 }
 0x66d   : > { %v1773_v24 = vmul.f32 %v3808_v16, %v1772_v21 }
 0x66e   : > { %v3103_v26 = vsel %vm532_vm0, %v4371_v22, 0  ;;  %v3387_v21 = vsub.f32 %v3385_v13, %v3386_v17  ;;  %v3392_v23 = vand.u32 4294901760, %v3391_v18 }
 0x66f   : > { %v1774_v27 = vadd.f32 %v3808_v16, %v1773_v24  ;;  %v3125_v29 = vand.u32 4294901760, %v3103_v26 }
 0x670   : > { %v3388_v24 = vand.u32 4294901760, %v3387_v21  ;;  %v3393_v25 = vsub.f32 %v3391_v18, %v3392_v23 }
 0x671   : > { %v1778_v32 = vsel %vm1777_vm10, %v3808_v16, %v1774_v27  ;;  %3171 = vmatmul.f32.vlgmr.msra.gmra.mxu3 %v3125_v29  ;;  %v3126_v33 = vsub.f32 %v3103_v26, %v3125_v29  ;;  %v3381_v16 = vsub.f32 %v3379_v6, %v3380_v12  ;;  %v3797_v27 = vld [vmem:[%s4557_s9] ss:$0 sm:$0xff] }
 0x672   : > { %v1783_v34 = vsel %vm1780_vm11, %v1782_v30, %v1778_v32  ;;  %3448 = vmatpush.msra.mxu3 %v4384_v41  ;;  %v3394_v26 = vand.u32 4294901760, %v3393_v25 }
 0x673   : > { %v1826_v35 = vmul.f32 %v4345_v39, %v1783_v34  ;;  %3201 = vmatmul.f32.vlgmr.msra.gmra.mxu0 %v3126_v33  ;;  %v3127_v36 = vand.u32 4294901760, %v3126_v33  ;;  %v3297_v39 = vld [vmem:[%s4558_s10 + $0x30] sm:$0xff]  ;;  %v3382_v20 = vand.u32 4294901760, %v3381_v16 }
 0x674   : > { %v4392_v42 = vand.u32 4294901760, %v3297_v39 }
 0x675   : > { %1830 = vst.msk [vmem:[%s4377_s28] sm:$0xff] %vm725_vm1, %v1826_v35  ;;  %3228 = vmatmul.f32.vlgmr.msra.gmra.mxu1 %v3127_v36  ;;  %v3128_v37 = vsub.f32 %v3126_v33, %v3127_v36 }
 0x676   : > { %v4401_v45 = vsub.f32 %v3297_v39, %v4392_v42  ;;  %3318 = vmatpush.msrb.mxu0 %v4392_v42  ;;  %3450 = vmatpush.msra.mxu3 %v4392_v42 }
 0x677   : > { %v3129_v38 = vand.u32 4294901760, %v3128_v37 }
 0x678   : > { %v3356_v51 = vand.u32 4294901760, %v4401_v45  ;;  %3320 = vmatpush.msrb.mxu0 %v4403_v46  ;;  %3452 = vmatpush.msra.mxu3 %v4403_v46 }
 0x679   : > { %3130 = vmatmul.f32.vlgmr.msra.gmra.mxu2 %v3129_v38  ;;  %3286 = vmatmul.f32.vlgmr.msrb.gmra.mxu3 %v3125_v29 }
 0x67a   : > { %3411 = vmatpush.msra.mxu2 %v4390_v50  ;;  %v3357_v56 = vsub.f32 %v4401_v45, %v3356_v51  ;;  %3322 = vmatpush.msrb.mxu0 %v4416_v53 }
 0x67b   : > { %3454 = vmatpush.msra.mxu3 %v4416_v53 }
 0x67c   : > { %3414 = vmatpush.msra.mxu2 %v4401_v45  ;;  %v3358_v61 = vand.u32 4294901760, %v3357_v56  ;;  %3324 = vmatpush.msrb.mxu0 %v3323_v59 }
 0x67d   : > { %3456 = vmatpush.msra.mxu3 %v3323_v59 }
 0x67e   : > { %3417 = vmatpush.msra.mxu2 %v4414_v52  ;;  %3359 = vmatpush.msrb.mxu1 %v3358_v61 }
 0x67f   : > { %3326 = vmatpush.msrb.mxu0 %v3325_v0  ;;  %3458 = vmatpush.msra.mxu3 %v3325_v0 }
 0x680   : > { %3420 = vmatpush.msra.mxu2 %v3367_v58  ;;  %3365 = vmatpush.msrb.mxu1 %v3364_v3 }
 0x681   : > { %3261 = vmatmul.f32.vlgmr.msrb.gmra.mxu2 %v3125_v29  ;;  %3328 = vmatpush.msrb.mxu0 %v3327_v7 }
 0x682   : > { %3423 = vmatpush.msra.mxu2 %v3373_v1  ;;  %3371 = vmatpush.msrb.mxu1 %v3370_v11  ;;  %v1747_v1 = vsub.f32 %v4264_v10, %v1739_v62 }
 0x683   : > { %3460 = vmatpush.msra.mxu3 %v3327_v7  ;;  %3330 = vmatpush.msrb.mxu0 %v3329_v14 }
 0x684   : > { %3426 = vmatpush.msra.mxu2 %v3379_v6  ;;  %3377 = vmatpush.msrb.mxu1 %v3376_v19  ;;  %v1752_v3 = vmul.f32 1.442695, %v1747_v1 }
 0x685   : > { %3481 = vmatpush.msra.mxu0 %v3350_v44  ;;  %3462 = vmatpush.msra.mxu3 %v3329_v14 }
 0x686   : > { %3429 = vmatpush.msra.mxu2 %v3385_v13  ;;  %3383 = vmatpush.msrb.mxu1 %v3382_v20  ;;  %3809 = vpow2.f32 %v1752_v3 }
 0x687   : > { %3485 = vmatpush.msra.mxu0 %v3356_v51 }
 0x688   : > { %3432 = vmatpush.msra.mxu2 %v3391_v18  ;;  %3389 = vmatpush.msrb.mxu1 %v3388_v24 }
 0x689   : > { %3489 = vmatpush.msra.mxu0 %v3362_v57 }
 0x68a   : > { %3395 = vmatpush.msrb.mxu1 %v3394_v26 }
 0x68b   : > { %3493 = vmatpush.msra.mxu0 %v3368_v63 }
 0x68c   : > { %3524 = vmatpush.msra.mxu1 %v4384_v41  ;;  %v3810_v6 = vpop.eup %3809 }
 0x68d   : > { %3497 = vmatpush.msra.mxu0 %v3374_v8  ;;  %v1748_v8 = vsub.f32 %v4275_v31, %v4362_v5 }
 0x68e   : > { %3526 = vmatpush.msra.mxu1 %v4392_v42 }
 0x68f   : > { %3501 = vmatpush.msra.mxu0 %v3380_v12  ;;  %v1754_v10 = vmul.f32 1.442695, %v1748_v8 }
 0x690   : > { %3528 = vmatpush.msra.mxu1 %v4403_v46 }
 0x691   : > { %3505 = vmatpush.msra.mxu0 %v3386_v17  ;;  %3811 = vpow2.f32 %v1754_v10 }
 0x692   : > { %3530 = vmatpush.msra.mxu1 %v4416_v53 }
 0x693   : > { %3509 = vmatpush.msra.mxu0 %v3392_v23 }
 0x694   : > { %3532 = vmatpush.msra.mxu1 %v3323_v59 }
 0x696   : > { %3534 = vmatpush.msra.mxu1 %v3325_v0 }
 0x697   : > { %v4465_v17 = vpop.eup %3811 }
 0x698   : > { %3536 = vmatpush.msra.mxu1 %v3327_v7  ;;  %v1761_v7 = vsel %vm725_vm1, %v3810_v6, 0.0  ;;  %v1764_v31 = vsel %vm725_vm1, %v4465_v17, 0.0 }
 0x69a   : > { %3538 = vmatpush.msra.mxu1 %v3329_v14 }
 0x6f0   : > { %v3202_v34 = vpop.f32.mrf.mxu0 }
 0x6f2   : > { %v3229_v36 = vpop.f32.mrf.mxu1 }
 0x6f4   : > { %v3172_v29 = vpop.f32.mrf.mxu3 }
 0x6fc   : > { %v3131_v30 = vpop.f32.mrf.mxu2  ;;  %v3287_v41 = vpop.f32.mrf.mxu3 }
 0x6fd   : > { %v3132_v32 = vadd.f32 %v3797_v27, %v3131_v30 }
 0x6ff   : > { %v3173_v33 = vadd.f32 %v3172_v29, %v3132_v32 }
 0x701   : > { %v3203_v35 = vadd.f32 %v3202_v34, %v3173_v33 }
 0x703   : > { %v3230_v37 = vadd.f32 %v3229_v36, %v3203_v35 }
 0x704   : > { %v3262_v38 = vpop.f32.mrf.mxu2 }
 0x705   : > { %v3263_v40 = vadd.f32 %v3262_v38, %v3230_v37 }
 0x707   : > { %v3288_v39 = vadd.f32 %v3287_v41, %v3263_v40 }
 0x709   : > { %v3290_v50 = vmax.f32 %v3288_v39, 0.0 }
 0x70b   : > { %v3305_v42 = vsel %vm3303_vm12, %v3290_v50, 0 }
 0x70c   : > { %v3331_v43 = vand.u32 4294901760, %v3305_v42 }
 0x70e   : > { %v3332_v44 = vsub.f32 %v3305_v42, %v3331_v43  ;;  %3397 = vmatmul.f32.vlgmr.msrb.gmra.mxu1 %v3331_v43 }
 0x710   : > { %v3333_v45 = vand.u32 4294901760, %v3332_v44  ;;  %3435 = vmatmul.f32.vlgmr.msra.gmra.mxu2 %v3332_v44 }
 0x712   : > { %v3334_v46 = vsub.f32 %v3332_v44, %v3333_v45  ;;  %3466 = vmatmul.f32.vlgmr.msra.gmra.mxu3 %v3333_v45 }
 0x714   : > { %v3335_v47 = vand.u32 4294901760, %v3334_v46 }
 0x716   : > { %3336 = vmatmul.f32.vlgmr.msrb.gmra.mxu0 %v3335_v47  ;;  %3540 = vmatmul.f32.vlgmr.msra.gmra.mxu1 %v3331_v43 }
 0x71e   : > { %3511 = vmatmul.f32.vlgmr.msra.gmra.mxu0 %v3331_v43 }
 0x78b   : > { %v3398_v51 = vpop.f32.mrf.mxu1 }
 0x793   : > { %v3337_v52 = vpop.f32.mrf.mxu0  ;;  %v3436_v55 = vpop.f32.mrf.mxu2 }
 0x794   : > { %v3338_v53 = vadd.f32 %v3798_v49, %v3337_v52  ;;  %v3541_v61 = vpop.f32.mrf.mxu1 }
 0x795   : > { %v3467_v57 = vpop.f32.mrf.mxu3 }
 0x796   : > { %v3399_v54 = vadd.f32 %v3398_v51, %v3338_v53  ;;  %v3799_v51 = vld [vmem:[%s4560_s12] ss:$0 sm:$0xff] }
 0x798   : > { %v3437_v56 = vadd.f32 %v3436_v55, %v3399_v54 }
 0x79a   : > { %v3468_v58 = vadd.f32 %v3467_v57, %v3437_v56 }
 0x79b   : > { %v3512_v59 = vpop.f32.mrf.mxu0 }
 0x79c   : > { %v3513_v60 = vadd.f32 %v3512_v59, %v3468_v58  ;;  %v3800_v58 = vld [vmem:[%s4593_s29] ss:$0 sm:$0xff]  ;;  %s3870_s29 = scalar_lea.hbm %s3869_s18, 8 }
 0x79d   : > { %p3871_p6 = scmp.ne.s32.totalorder %s3869_s18, %s3870_s29  ;;  %p3876_p1 = scmp.lt.s32.totalorder %s3874_s0, %s3870_s29 }
 0x79e   : > { %v3542_v63 = vadd.f32 %v3541_v61, %v3513_v60 }
 0x79f   : > { %p3872_p9 = pnand %p3871_p6, %p4090_p11  ;;  %p3877_p3 = por %p3876_p1, %p3875_p0 }
 0x7a0   : > { %v3544_v0 = vadd.f32 %v3542_v63, %v4371_v22 }
 0x7a1   : > { %p3873_p13 = pneg %p3872_p9 }
 0x7a2   : > { %v3547_v2 = vsel %vm532_vm0, %v3544_v0, 0.0 }
 0x7a3   : > { %3548 = vadd.xlane.f32.xlu2 %v3547_v2  ;;  %p3878_p4 = pnand %p3877_p3, %p3873_p13 }
 0x7ab   : > { %1744 = vmax.xlane.f32.xlu2 %v1743_v4 }
 0x7b3   : > { %1762 = vadd.xlane.f32.xlu2 %v1761_v7 }
 0x816   : > { %v3549_v9 = vpop.xlane.xlu2 %3548 }
 0x817   : > { %v3550_v22 = vmul.f32 %v3549_v9, %v4334_v28 }
 0x819   : > { %v4459_v11 = vsub.f32 %v3544_v0, %v3550_v22 }
 0x81b   : > { %v3552_v12 = vmul.f32 %v4459_v11, %v4459_v11 }
 0x81d   : > { %v3553_v13 = vsel %vm532_vm0, %v3552_v12, 0.0 }
 0x81e   : > { %3554 = vadd.xlane.f32.xlu0 %v3553_v13  ;;  %v1745_v14 = vpop.xlane.xlu2 %1744 }
 0x81f   : > { %v1749_v15 = vsub.f32 %v4282_v48, %v1745_v14 }
 0x821   : > { %v1756_v16 = vmul.f32 1.442695, %v1749_v15 }
 0x823   : > { %3813 = vpow2.f32 %v1756_v16 }
 0x826   : > { %1765 = vadd.xlane.f32.xlu0 %v1764_v31  ;;  %v1763_v5 = vpop.xlane.xlu2 %1762 }
 0x827   : > { %3815 = vrcp.f32 %v1763_v5  ;;  %v1795_v23 = vand.u32 2147483648, %v1763_v5  ;;  %v1793_v25 = vand.u32 2147483647, %v1763_v5  ;;  %vm1789_vm14 = vweird.f32 %v1763_v5 }
 0x829   : > { %v4469_v18 = vpop.eup %3813  ;;  %v1796_v27 = vor.u32 1.1754944e-38, %v1795_v23  ;;  %vm1794_vm2 = vcmp.eq.f32.partialorder %v1793_v25, 8.507059e+37 }
 0x82a   : > { %v1767_v19 = vsel %vm725_vm1, %v4469_v18, 0.0 }
 0x82b   : > { %1768 = vadd.xlane.f32.xlu1 %v1767_v19 }
 0x82d   : > { %v3816_v20 = vpop.eup %3815 }
 0x82e   : > { %v1785_v21 = vmul.f32 %v3816_v20, %v1763_v5  ;;  %vm1790_vm13 = vweird.f32 %v3816_v20 }
 0x82f   : > { %vm1791_vm15 = vmor %vm1789_vm14, %vm1790_vm13 }
 0x830   : > { %v1786_v48 = vsub.f32 1.0, %v1785_v21 }
 0x832   : > { %v1787_v24 = vmul.f32 %v3816_v20, %v1786_v48 }
 0x834   : > { %v1788_v26 = vadd.f32 %v3816_v20, %v1787_v24 }
 0x836   : > { %v1792_v29 = vsel %vm1791_vm15, %v3816_v20, %v1788_v26 }
 0x837   : > { %v1797_v30 = vsel %vm1794_vm2, %v1796_v27, %v1792_v29 }
 0x838   : > { %v1827_v32 = vmul.f32 %v3810_v6, %v1797_v30 }
 0x83a   : > { %1831 = vst.msk [vmem:[%s4377_s28 + $0x8] sm:$0xff] %vm725_vm1, %v1827_v32 }
 0x891   : > { %v3555_v33 = vpop.xlane.xlu0 %3554 }
 0x892   : > { %v3556_v34 = vmul.f32 %v3555_v33, %v4334_v28 }
 0x894   : > { %v3557_v35 = vadd.f32 1e-05, %v3556_v34 }
 0x896   : > { %3817 = vrsqrt.f32 %v3557_v35  ;;  %vm3564_vm4 = vweird.f32 %v3557_v35 }
 0x899   : > { %v1766_v36 = vpop.xlane.xlu0 %1765 }
 0x89a   : > { %3819 = vrcp.f32 %v1766_v36  ;;  %v1809_v28 = vand.u32 2147483648, %v1766_v36  ;;  %v1807_v49 = vand.u32 2147483647, %v1766_v36  ;;  %vm1803_vm7 = vweird.f32 %v1766_v36 }
 0x89c   : > { %v3818_v37 = vpop.eup %3817  ;;  %v1810_v56 = vor.u32 1.1754944e-38, %v1809_v28  ;;  %vm1808_vm9 = vcmp.eq.f32.partialorder %v1807_v49, 8.507059e+37 }
 0x89d   : > { %v3559_v38 = vmul.f32 %v3818_v37, %v3557_v35  ;;  %vm3565_vm3 = vweird.f32 %v3818_v37 }
 0x89e   : > { %v1769_v40 = vpop.xlane.xlu1 %1768  ;;  %vm3566_vm6 = vmor %vm3564_vm4, %vm3565_vm3 }
 0x89f   : > { %v3560_v41 = vmul.f32 %v3818_v37, %v3559_v38  ;;  %3821 = vrcp.f32 %v1769_v40  ;;  %v1821_v60 = vand.u32 2147483647, %v1769_v40  ;;  %v1823_v61 = vand.u32 2147483648, %v1769_v40 }
 0x8a0   : > { %v3820_v39 = vpop.eup %3819  ;;  %vm1817_vm11 = vweird.f32 %v1769_v40 }
 0x8a1   : > { %v3561_v50 = vmul.f32 0.5, %v3560_v41  ;;  %v1799_v42 = vmul.f32 %v3820_v39, %v1766_v36  ;;  %vm1804_vm5 = vweird.f32 %v3820_v39  ;;  %v1824_v4 = vor.u32 1.1754944e-38, %v1823_v61 }
 0x8a2   : > { %vm1805_vm8 = vmor %vm1803_vm7, %vm1804_vm5  ;;  %vm1822_vm13 = vcmp.eq.f32.partialorder %v1821_v60, 8.507059e+37 }
 0x8a3   : > { %v3562_v43 = vsub.f32 1.5, %v3561_v50  ;;  %v1800_v44 = vsub.f32 1.0, %v1799_v42 }
 0x8a5   : > { %v3822_v45 = vpop.eup %3821  ;;  %v3563_v46 = vmul.f32 %v3818_v37, %v3562_v43  ;;  %v1801_v47 = vmul.f32 %v3820_v39, %v1800_v44 }
 0x8a6   : > { %v1813_v52 = vmul.f32 %v3822_v45, %v1769_v40  ;;  %vm1818_vm10 = vweird.f32 %v3822_v45 }
 0x8a7   : > { %v3567_v53 = vsel %vm3566_vm6, %v3818_v37, %v3563_v46  ;;  %v1802_v54 = vadd.f32 %v3820_v39, %v1801_v47  ;;  %vm1819_vm12 = vmor %vm1817_vm11, %vm1818_vm10 }
 0x8a8   : > { %v3568_v55 = vmul.f32 %v3567_v53, %v4459_v11  ;;  %v1814_v57 = vsub.f32 1.0, %v1813_v52 }
 0x8a9   : > { %v1806_v59 = vsel %vm1805_vm8, %v3820_v39, %v1802_v54 }
 0x8aa   : > { %v3572_v62 = vmul.f32 %v3799_v51, %v3568_v55  ;;  %v1811_v63 = vsel %vm1808_vm9, %v1810_v56, %v1806_v59  ;;  %v1815_v0 = vmul.f32 %v3822_v45, %v1814_v57 }
 0x8ab   : > { %v1828_v1 = vmul.f32 %v4465_v17, %v1811_v63 }
 0x8ac   : > { %v1816_v2 = vadd.f32 %v3822_v45, %v1815_v0  ;;  %v3576_v3 = vadd.f32 %v3800_v58, %v3572_v62 }
 0x8ad   : > { %1832 = vst.msk [vmem:[%s4377_s28 + $0x10] sm:$0xff] %vm725_vm1, %v1828_v1 }
 0x8ae   : > { %v1820_v6 = vsel %vm1819_vm12, %v3822_v45, %v1816_v2  ;;  %3577 = vst.msk [vmem:[%s515_s27] sm:$0xff] %vm532_vm0, %v3576_v3 }
 0x8af   : > { %v1825_v7 = vsel %vm1822_vm13, %v1824_v4, %v1820_v6 }
 0x8b0   : > { %3881 = shalt.err (!%p3878_p4)
}
 0x8b1   : > { %3738 = dma.vmem_to_hbm [thread:$0]  (%p4090_p11), %s3597_s26, 128, %s3599_s25, %s3579_s20   ;;  %v1829_v8 = vmul.f32 %v4469_v18, %v1825_v7 }
 0x8b2   : > { %s3584_s27 = scalar_lea.sflag [#allocation7], %s4126_s17  ;;  %s3896_s22 = sshra.s32 %s3613_s15, 4  ;;  %s3897_s22 = int_to_ptr.hbm [resolvable:$true] %s3896_s22 }
 0x8b3   : > { %1833 = vst.msk [vmem:[%s4377_s28 + $0x18] sm:$0xff] %vm725_vm1, %v1829_v8  ;;  %s3898_s1 = scalar_lea.hbm %s3897_s22, 32  ;;  %s3902_s29 = scalar_lea.hbm %s4594_s13, 64 }
 0x8b4   : > { %p3899_p7 = scmp.ne.s32.totalorder %s3897_s22, %s3898_s1  ;;  %p3903_p10 = scmp.lt.s32.totalorder %s3897_s22, %s4594_s13 }
 0x8b5   : > { %p3904_p2 = scmp.lt.s32.totalorder %s3902_s29, %s3898_s1 }
 0x8b6   : > { %p3900_p5 = pnand %p3899_p7, %p4090_p11 }
 0x8b7   : > { %p3905_p6 = por %p3904_p2, %p3903_p10 }
 0x8b8   : > { %p3901_p8 = pneg %p3900_p5 }
 0x8ba   : > { %p3906_p9 = pnand %p3905_p6, %p3901_p8 }
 0x8bc   : > { %3909 = shalt.err (!%p3906_p9)
}
 0x8bd   : > { %s3959_s17 = smov 128   ;;  %s4596_s28 = smov 8  }
 0x8be   : > { %3739 = dma.vmem_to_hbm [thread:$0]  (%p4090_p11), %s4501_s23, 512, %s3613_s15, %s3584_s27, %s3959_s17, %s3959_s17, %s4596_s28  }
 0x8bf PF: > { %s4597_s26 = sld [smem:[#allocation11_spill]]  ;;  %p4599_p13 = scmp.ge.s32.totalorder %s3952_s21, 2 }
 0x8c1   : > { %p3747_p0 = pnand %p4599_p13, %p4094_p12 }
 0x8c3   : > { %p3748_p1 = pneg %p3747_p0 }
 0x8c5   : > { %s3627_s20 = sand.u32 1, %s4597_s26  }
 0x8c6   : > { %s3628_s22 = scalar_lea.sflag [#allocation4], %s3627_s20 }
 0x8c7   : > { %3931 = dma.done.wait (%p3748_p1), %s3628_s22, 128  }
 0x8c8   : > { %3933 = vsyncadd (%p3748_p1), %s3628_s22, 4294967168  ;;  %s3638_s1 = scalar_lea.sflag [#allocation7], %s3627_s20 }
 0x8c9   : > { %3935 = dma.done.wait (%p3748_p1), %s3638_s1, 512  }
 0x8ca   : > { %3937 = vsyncadd (%p3748_p1), %s3638_s1, 4294966784  ;;  %s4600_s21 = sld [smem:[#allocation13_spill]]  ;;  %s4603_s18 = smov %s3944_s19 }
 0x8cb   : > { %s4601_s30 = sld [smem:[#allocation12_spill]] }
 0x8cc   : > { %s4602_s20 = sld [smem:[#allocation14_spill]] }
 0x8d0   : > { %p32_p11 = scmp.ge.s32.totalorder %s4600_s21, 4  }
 0x8d1   : > { %s4604_s19 = smov %s4601_s30 }
 0x8d2   :  { %34 = sbr.rel (!%p32_p11) target bundleno = 13 (0xd), region = 138 }
 0x8d7   :  { %3644 = vsyncpa [#allocation3], 1 }
 0x8d8   :  { %3646 = vsyncpa [#allocation3 + $0x1], 1 }
 0x8d9   :  { %3647 = vsyncpa [#allocation4], 1 }
 0x8da   :  { %3649 = vsyncpa [#allocation4 + $0x1], 1 }
 0x8db   :  { %3650 = vsyncpa [#allocation7], 1 }
 0x8dc   :  { %3652 = vsyncpa [#allocation7 + $0x1], 1 }

</bundles_post_ra>
